<compile_context>
chip_gen: v7x
topology: tpu7x:2x2x1
jax: 0.10.0
libtpu: 0.0.40
codegen_flags: <defaults>
</compile_context>

<pallas_src>
import jax
import jax.numpy as jnp
from jax.experimental import pallas as pl
from jax.experimental.pallas import tpu as pltpu

# Small, config-consistent shapes (d_model divisible by n_head).
B, L, D_MODEL, N_HEAD, D_FFN = 2, 8, 32, 4, 64
D_HEAD = D_MODEL // N_HEAD
LN_EPS = 1e-5


def _layer_norm(y, gamma, beta):
    mu = jnp.mean(y, axis=-1, keepdims=True)
    var = jnp.mean((y - mu) ** 2, axis=-1, keepdims=True)
    return (y - mu) * jax.lax.rsqrt(var + LN_EPS) * gamma + beta


def _gelu_exact(x):
    return 0.5 * x * (1.0 + jax.lax.erf(x / jnp.sqrt(jnp.float32(2.0))))


def gtmgc_block_kernel(
    x_ref,      # (B*L, D)           node embeddings, batch flattened into rows
    m_ref,      # (B, 1, 1, L)       node mask (1 valid, 0 invalid), masks key columns
    a_ref,      # (B, 1, L, L)       adjacency
    dist_ref,   # (B, 1, L, L)       row-subtracted distance
    wqkv_ref,   # (3H, D, Dh)        per-head Q/K/V projection weights (stacked)
    bqkv_ref,   # (3H, 1, Dh)        per-head Q/K/V biases (stacked)
    wo_ref,     # (H, Dh, D)         per-head slices of the output projection
    wad_ref,    # (2, H, 1, 1)       [weight_A; weight_D]
    vec_ref,    # (6, D)             rows: bo, g1, beta1, g2, beta2, b2
    w1_ref,     # (D, D_FFN)
    b1_ref,     # (1, D_FFN)
    w2_ref,     # (D_FFN, D)
    out_ref,    # (B*L, D)
    attnw_ref,  # (B, H, L, L)
):
    x = x_ref[...]                                   # (B*L, D)
    vec = vec_ref[...]
    bo, g1, beta1 = vec[0:1, :], vec[1:2, :], vec[2:3, :]
    g2, beta2, b2 = vec[3:4, :], vec[4:5, :], vec[5:6, :]

    wqkv = wqkv_ref[...]                             # (3H, D, Dh)
    bqkv = bqkv_ref[...]                             # (3H, 1, Dh)
    wo_h = wo_ref[...]                               # (H, Dh, D)
    w_a = wad_ref[0]                                 # (H, 1, 1)
    w_d = wad_ref[1]                                 # (H, 1, 1)

    # Fused mask / MSRSA-bias / scale factor, all heads + all batch at once.
    # where(m>0, S, 0) then S*(1 + A*wA + D*wD)/scale  ==  S * factor
    inv_scale = jnp.float32(1.0 / (D_HEAD ** 0.5))
    ind = (m_ref[...] > 0.0).astype(jnp.float32)                     # (B,1,1,L)
    factor = ind * (1.0 + a_ref[...] * w_a + dist_ref[...] * w_d) * inv_scale  # (B,H,L,L)

    y_rows = []
    for b in range(B):                               # B=2, static unroll
        xb = x[b * L:(b + 1) * L, :]                 # (L, D) tile-aligned row slice
        xbb = jnp.broadcast_to(xb, (3 * N_HEAD, L, D_MODEL))
        # All-head Q/K/V in one batched matmul: (3H,L,D) x (3H,D,Dh) -> (3H,L,Dh)
        qkv = jnp.einsum('hld,hdk->hlk', xbb, wqkv,
                         preferred_element_type=jnp.float32) + bqkv
        q = qkv[0:N_HEAD]
        k = qkv[N_HEAD:2 * N_HEAD]
        v = qkv[2 * N_HEAD:3 * N_HEAD]

        # Scores for all heads: (H,L,Dh) x (H,L,Dh) -> (H,L,L)
        s = jnp.einsum('hld,hmd->hlm', q, k, preferred_element_type=jnp.float32)
        s = s * factor[b]

        # softmax over keys (reciprocal on the EUP, one per row instead of a divide per elem)
        s = s - jnp.max(s, axis=-1, keepdims=True)
        e = jnp.exp(s)
        w = e * pl.reciprocal(jnp.sum(e, axis=-1, keepdims=True), approx=True)
        attnw_ref[b] = w                             # single (H,L,L) slab store

        # Weighted values + output projection without any lane concat:
        # concat_h(o_h) @ Wo  ==  sum_h o_h @ Wo[h*Dh:(h+1)*Dh, :]
        o = jnp.einsum('hlm,hmd->hld', w, v, preferred_element_type=jnp.float32)
        y_rows.append(jnp.sum(
            jnp.einsum('hld,hdk->hlk', o, wo_h, preferred_element_type=jnp.float32),
            axis=0))                                 # (L, D)

    y = jnp.concatenate(y_rows, axis=0) + bo         # (B*L, D)

    # AddNorm #1 (pre_ln=True)
    x1 = x + _layer_norm(y, g1, beta1)

    # Position-wise FFN on the fused (B*L, D) slab
    h1 = _gelu_exact(jnp.dot(x1, w1_ref[...], preferred_element_type=jnp.float32)
                     + b1_ref[...])
    y2 = jnp.dot(h1, w2_ref[...], preferred_element_type=jnp.float32) + b2

    # AddNorm #2 — single full-slab store
    out_ref[...] = x1 + _layer_norm(y2, g2, beta2)


def _full_spec(shape):
    nd = len(shape)
    return pl.BlockSpec(shape, lambda i, _nd=nd: (0,) * _nd)


def gtmgc_block(x, mask, adj, dist, p):
    # --- wrapper-side layout plumbing (outside the kernel, free) ---
    x_flat = x.reshape(B * L, D_MODEL)
    m4 = mask.reshape(B, 1, 1, L)
    adj4 = adj.reshape(B, 1, L, L)
    dist4 = dist.reshape(B, 1, L, L)

    def split_w(w):   # (D, D) -> (H, D, Dh): per-head column blocks
        return w.reshape(D_MODEL, N_HEAD, D_HEAD).transpose(1, 0, 2)

    def split_b(b):   # (1, D) -> (H, 1, Dh)
        return b.reshape(1, N_HEAD, D_HEAD).transpose(1, 0, 2)

    wqkv = jnp.concatenate([split_w(p["wq"]), split_w(p["wk"]), split_w(p["wv"])], axis=0)
    bqkv = jnp.concatenate([split_b(p["bq"]), split_b(p["bk"]), split_b(p["bv"])], axis=0)
    wo_h = p["wo"].reshape(N_HEAD, D_HEAD, D_MODEL)           # per-head row blocks of Wo
    wad = jnp.stack([p["wA"], p["wD"]], axis=0).reshape(2, N_HEAD, 1, 1)
    vec = jnp.concatenate(
        [p["bo"], p["g1"], p["beta1"], p["g2"], p["beta2"], p["b2"]], axis=0)  # (6, D)

    args = [x_flat, m4, adj4, dist4, wqkv, bqkv, wo_h, wad, vec,
            p["w1"], p["b1"], p["w2"]]
    in_specs = [_full_spec(a.shape) for a in args]

    out_shape = (
        jax.ShapeDtypeStruct((B * L, D_MODEL), jnp.float32),
        jax.ShapeDtypeStruct((B, N_HEAD, L, L), jnp.float32),
    )
    out_specs = (
        _full_spec((B * L, D_MODEL)),
        _full_spec((B, N_HEAD, L, L)),
    )

    fn = pl.pallas_call(
        gtmgc_block_kernel,
        grid=(1,),
        in_specs=in_specs,
        out_specs=out_specs,
        out_shape=out_shape,
        compiler_params=pltpu.CompilerParams(dimension_semantics=("arbitrary",)),
    )
    out_flat, attnw = fn(*args)
    return out_flat.reshape(B, L, D_MODEL), attnw


def reference(x, mask, adj, dist, p):
    """Pure-JAX reference implementing the original (torch-ordered) forward pass."""
    q = x @ p["wq"] + p["bq"]
    k = x @ p["wk"] + p["bk"]
    v = x @ p["wv"] + p["bv"]

    def split(t):
        return t.reshape(B, L, N_HEAD, D_HEAD).transpose(0, 2, 1, 3)

    q, k, v = split(q), split(k), split(v)
    s = jnp.einsum("bhld,bhmd->bhlm", q, k)
    s = jnp.where(mask[:, None, None, :] > 0.0, s, 0.0)
    s = s + s * (adj[:, None] * p["wA"][None, :, None, None]) \
          + s * (dist[:, None] * p["wD"][None, :, None, None])
    s = s / (D_HEAD ** 0.5)
    w = jax.nn.softmax(s, axis=-1)
    o = jnp.einsum("bhlm,bhmd->bhld", w, v)
    o = o.transpose(0, 2, 1, 3).reshape(B, L, D_MODEL)
    y = o @ p["wo"] + p["bo"]
    x1 = x + _layer_norm(y, p["g1"], p["beta1"])
    h1 = _gelu_exact(x1 @ p["w1"] + p["b1"])
    y2 = h1 @ p["w2"] + p["b2"]
    out = x1 + _layer_norm(y2, p["g2"], p["beta2"])
    return out, w


def make_params(key):
    ks = jax.random.split(key, 12)

    def lin(k, d_in, d_out):
        kw, kb = jax.random.split(k)
        bound = 1.0 / (d_in ** 0.5)
        w = jax.random.uniform(kw, (d_in, d_out), jnp.float32, -bound, bound)
        b = jax.random.uniform(kb, (1, d_out), jnp.float32, -bound, bound)
        return w, b

    p = {}
    p["wq"], p["bq"] = lin(ks[0], D_MODEL, D_MODEL)
    p["wk"], p["bk"] = lin(ks[1], D_MODEL, D_MODEL)
    p["wv"], p["bv"] = lin(ks[2], D_MODEL, D_MODEL)
    p["wo"], p["bo"] = lin(ks[3], D_MODEL, D_MODEL)
    p["wA"] = jax.random.normal(ks[4], (N_HEAD,), jnp.float32)
    p["wD"] = jax.random.normal(ks[5], (N_HEAD,), jnp.float32)
    p["g1"] = jnp.ones((1, D_MODEL), jnp.float32)
    p["beta1"] = jnp.zeros((1, D_MODEL), jnp.float32)
    p["g2"] = jnp.ones((1, D_MODEL), jnp.float32)
    p["beta2"] = jnp.zeros((1, D_MODEL), jnp.float32)
    p["w1"], p["b1"] = lin(ks[6], D_MODEL, D_FFN)
    p["w2"], p["b2"] = lin(ks[7], D_FFN, D_MODEL)
    return p


if __name__ == "__main__":
    key = jax.random.PRNGKey(0)
    k_x, k_a, k_d, k_p = jax.random.split(key, 4)

    x = jax.random.normal(k_x, (B, L, D_MODEL), jnp.float32)
    mask = jnp.ones((B, L), jnp.float32).at[1, -1].set(0.0)        # exercise masking
    adj = jax.random.bernoulli(k_a, 0.4, (B, L, L)).astype(jnp.float32)
    dist_raw = jax.random.uniform(k_d, (B, L, L), jnp.float32, 0.0, 5.0)
    dist = dist_raw - jnp.max(dist_raw, axis=-1, keepdims=True)    # row-subtracted

    params = make_params(k_p)

    out, attn_w = gtmgc_block(x, mask, adj, dist, params)
    out = jax.block_until_ready(out)
    attn_w = jax.block_until_ready(attn_w)

    ref_out, ref_w = reference(x, mask, adj, dist, params)
    assert out.shape == (B, L, D_MODEL) and attn_w.shape == (B, N_HEAD, L, L)
    # tolerances account for the approximate (EUP) softmax reciprocal
    assert jnp.allclose(out, ref_out, rtol=1e-2, atol=1e-2), "output mismatch"
    assert jnp.allclose(attn_w, ref_w, rtol=5e-3, atol=5e-3), "attn weight mismatch"

    print("KERNEL_OK")
</pallas_src>

<mosaic_0001>
module attributes {stable_mosaic.version = 11 : i64} {
  func.func @gtmgc_block_kernel(%arg0: i32, %arg1: memref<16x32xf32, #tpu.memory_space<vmem>>, %arg2: memref<2x1x1x8xf32, #tpu.memory_space<vmem>>, %arg3: memref<2x1x8x8xf32, #tpu.memory_space<vmem>>, %arg4: memref<2x1x8x8xf32, #tpu.memory_space<vmem>>, %arg5: memref<12x32x8xf32, #tpu.memory_space<vmem>>, %arg6: memref<12x1x8xf32, #tpu.memory_space<vmem>>, %arg7: memref<4x8x32xf32, #tpu.memory_space<vmem>>, %arg8: memref<2x4x1x1xf32, #tpu.memory_space<vmem>>, %arg9: memref<6x32xf32, #tpu.memory_space<vmem>>, %arg10: memref<32x64xf32, #tpu.memory_space<vmem>>, %arg11: memref<1x64xf32, #tpu.memory_space<vmem>>, %arg12: memref<64x32xf32, #tpu.memory_space<vmem>>, %arg13: memref<16x32xf32, #tpu.memory_space<vmem>>, %arg14: memref<2x4x8x8xf32, #tpu.memory_space<vmem>>) attributes {dimension_semantics = [#tpu.dimension_semantics<arbitrary>], iteration_bounds = array<i64: 1>, scalar_prefetch = 0 : i64, scratch_operands = 0 : i64, tpu.core_type = #tpu.core_type<tc>, window_params = [{pipeline_mode = #tpu.pipeline_mode<synchronous>, transform_indices = @transform_0, window_bounds = array<i64: 16, 32>}, {pipeline_mode = #tpu.pipeline_mode<synchronous>, transform_indices = @transform_1, window_bounds = array<i64: 2, 1, 1, 8>}, {pipeline_mode = #tpu.pipeline_mode<synchronous>, transform_indices = @transform_2, window_bounds = array<i64: 2, 1, 8, 8>}, {pipeline_mode = #tpu.pipeline_mode<synchronous>, transform_indices = @transform_3, window_bounds = array<i64: 2, 1, 8, 8>}, {pipeline_mode = #tpu.pipeline_mode<synchronous>, transform_indices = @transform_4, window_bounds = array<i64: 12, 32, 8>}, {pipeline_mode = #tpu.pipeline_mode<synchronous>, transform_indices = @transform_5, window_bounds = array<i64: 12, 1, 8>}, {pipeline_mode = #tpu.pipeline_mode<synchronous>, transform_indices = @transform_6, window_bounds = array<i64: 4, 8, 32>}, {pipeline_mode = #tpu.pipeline_mode<synchronous>, transform_indices = @transform_7, window_bounds = array<i64: 2, 4, 1, 1>}, {pipeline_mode = #tpu.pipeline_mode<synchronous>, transform_indices = @transform_8, window_bounds = array<i64: 6, 32>}, {pipeline_mode = #tpu.pipeline_mode<synchronous>, transform_indices = @transform_9, window_bounds = array<i64: 32, 64>}, {pipeline_mode = #tpu.pipeline_mode<synchronous>, transform_indices = @transform_10, window_bounds = array<i64: 1, 64>}, {pipeline_mode = #tpu.pipeline_mode<synchronous>, transform_indices = @transform_11, window_bounds = array<i64: 64, 32>}, {pipeline_mode = #tpu.pipeline_mode<synchronous>, transform_indices = @transform_12, window_bounds = array<i64: 16, 32>}, {pipeline_mode = #tpu.pipeline_mode<synchronous>, transform_indices = @transform_13, window_bounds = array<i64: 2, 4, 8, 8>}]} {
    %c0 = arith.constant 0 : index
    %c0_0 = arith.constant 0 : index
    %0 = vector.load %arg1[%c0, %c0_0] : memref<16x32xf32, #tpu.memory_space<vmem>>, vector<16x32xf32>
    %c0_1 = arith.constant 0 : index
    %c0_2 = arith.constant 0 : index
    %1 = vector.load %arg9[%c0_1, %c0_2] : memref<6x32xf32, #tpu.memory_space<vmem>>, vector<6x32xf32>
    %2 = vector.extract_strided_slice %1 {offsets = [0, 0], sizes = [1, 32], strides = [1, 1]} : vector<6x32xf32> to vector<1x32xf32>
    %3 = vector.extract_strided_slice %1 {offsets = [1, 0], sizes = [1, 32], strides = [1, 1]} : vector<6x32xf32> to vector<1x32xf32>
    %4 = vector.extract_strided_slice %1 {offsets = [2, 0], sizes = [1, 32], strides = [1, 1]} : vector<6x32xf32> to vector<1x32xf32>
    %5 = vector.extract_strided_slice %1 {offsets = [3, 0], sizes = [1, 32], strides = [1, 1]} : vector<6x32xf32> to vector<1x32xf32>
    %6 = vector.extract_strided_slice %1 {offsets = [4, 0], sizes = [1, 32], strides = [1, 1]} : vector<6x32xf32> to vector<1x32xf32>
    %7 = vector.extract_strided_slice %1 {offsets = [5, 0], sizes = [1, 32], strides = [1, 1]} : vector<6x32xf32> to vector<1x32xf32>
    %c0_3 = arith.constant 0 : index
    %c0_4 = arith.constant 0 : index
    %c0_5 = arith.constant 0 : index
    %8 = vector.load %arg5[%c0_3, %c0_4, %c0_5] : memref<12x32x8xf32, #tpu.memory_space<vmem>>, vector<12x32x8xf32>
    %c0_6 = arith.constant 0 : index
    %c0_7 = arith.constant 0 : index
    %c0_8 = arith.constant 0 : index
    %9 = vector.load %arg6[%c0_6, %c0_7, %c0_8] : memref<12x1x8xf32, #tpu.memory_space<vmem>>, vector<12x1x8xf32>
    %c0_9 = arith.constant 0 : index
    %c0_10 = arith.constant 0 : index
    %c0_11 = arith.constant 0 : index
    %10 = vector.load %arg7[%c0_9, %c0_10, %c0_11] : memref<4x8x32xf32, #tpu.memory_space<vmem>>, vector<4x8x32xf32>
    %c0_12 = arith.constant 0 : index
    %c0_13 = arith.constant 0 : index
    %c0_14 = arith.constant 0 : index
    %c0_15 = arith.constant 0 : index
    %11 = vector.load %arg8[%c0_12, %c0_13, %c0_14, %c0_15] : memref<2x4x1x1xf32, #tpu.memory_space<vmem>>, vector<1x4x1x1xf32>
    %12 = vector.shape_cast %11 : vector<1x4x1x1xf32> to vector<4x1x1xf32>
    %c1 = arith.constant 1 : index
    %c0_16 = arith.constant 0 : index
    %c0_17 = arith.constant 0 : index
    %c0_18 = arith.constant 0 : index
    %13 = vector.load %arg8[%c1, %c0_16, %c0_17, %c0_18] : memref<2x4x1x1xf32, #tpu.memory_space<vmem>>, vector<1x4x1x1xf32>
    %14 = vector.shape_cast %13 : vector<1x4x1x1xf32> to vector<4x1x1xf32>
    %c0_19 = arith.constant 0 : index
    %c0_20 = arith.constant 0 : index
    %c0_21 = arith.constant 0 : index
    %c0_22 = arith.constant 0 : index
    %15 = vector.load %arg2[%c0_19, %c0_20, %c0_21, %c0_22] : memref<2x1x1x8xf32, #tpu.memory_space<vmem>>, vector<2x1x1x8xf32>
    %cst = arith.constant 0.000000e+00 : f32
    %16 = vector.broadcast %cst : f32 to vector<2x1x1x8xf32>
    %17 = arith.cmpf ogt, %15, %16 : vector<2x1x1x8xf32>
    %18 = arith.extui %17 : vector<2x1x1x8xi1> to vector<2x1x1x8xi32>
    %19 = arith.sitofp %18 : vector<2x1x1x8xi32> to vector<2x1x1x8xf32>
    %c0_23 = arith.constant 0 : index
    %c0_24 = arith.constant 0 : index
    %c0_25 = arith.constant 0 : index
    %c0_26 = arith.constant 0 : index
    %20 = vector.load %arg3[%c0_23, %c0_24, %c0_25, %c0_26] : memref<2x1x8x8xf32, #tpu.memory_space<vmem>>, vector<2x1x8x8xf32>
    %21 = vector.shape_cast %12 : vector<4x1x1xf32> to vector<1x4x1x1xf32>
    %22 = vector.broadcast %20 : vector<2x1x8x8xf32> to vector<2x4x8x8xf32>
    %23 = vector.broadcast %21 : vector<1x4x1x1xf32> to vector<2x4x8x8xf32>
    %24 = arith.mulf %22, %23 : vector<2x4x8x8xf32>
    %cst_27 = arith.constant 1.000000e+00 : f32
    %25 = vector.broadcast %cst_27 : f32 to vector<2x4x8x8xf32>
    %26 = arith.addf %25, %24 : vector<2x4x8x8xf32>
    %c0_28 = arith.constant 0 : index
    %c0_29 = arith.constant 0 : index
    %c0_30 = arith.constant 0 : index
    %c0_31 = arith.constant 0 : index
    %27 = vector.load %arg4[%c0_28, %c0_29, %c0_30, %c0_31] : memref<2x1x8x8xf32, #tpu.memory_space<vmem>>, vector<2x1x8x8xf32>
    %28 = vector.shape_cast %14 : vector<4x1x1xf32> to vector<1x4x1x1xf32>
    %29 = vector.broadcast %27 : vector<2x1x8x8xf32> to vector<2x4x8x8xf32>
    %30 = vector.broadcast %28 : vector<1x4x1x1xf32> to vector<2x4x8x8xf32>
    %31 = arith.mulf %29, %30 : vector<2x4x8x8xf32>
    %32 = arith.addf %26, %31 : vector<2x4x8x8xf32>
    %33 = vector.broadcast %19 : vector<2x1x1x8xf32> to vector<2x4x8x8xf32>
    %34 = arith.mulf %33, %32 : vector<2x4x8x8xf32>
    %cst_32 = arith.constant 0.353553385 : f32
    %35 = vector.broadcast %cst_32 : f32 to vector<2x4x8x8xf32>
    %36 = arith.mulf %34, %35 : vector<2x4x8x8xf32>
    %37 = vector.extract_strided_slice %0 {offsets = [0, 0], sizes = [8, 32], strides = [1, 1]} : vector<16x32xf32> to vector<8x32xf32>
    %38 = vector.shape_cast %37 : vector<8x32xf32> to vector<1x8x32xf32>
    %39 = vector.broadcast %38 : vector<1x8x32xf32> to vector<12x8x32xf32>
    "tpu.trace_start"() <{level = 10 : i32, message = "hld,hdk->hlk"}> : () -> ()
    %cst_33 = arith.constant dense<0.000000e+00> : vector<12x8x8xf32>
    %40 = tpu.matmul %39, %8, %cst_33 {dimension_numbers = #tpu.dot_dimension_numbers<[2], [1], [1], [2], [0, 0, 0, 1, 1, 2], [0], [0]>} : vector<12x8x32xf32>, vector<12x32x8xf32>, vector<12x8x8xf32> -> vector<12x8x8xf32>
    "tpu.trace_stop"() : () -> ()
    %41 = vector.broadcast %9 : vector<12x1x8xf32> to vector<12x8x8xf32>
    %42 = arith.addf %40, %41 : vector<12x8x8xf32>
    %43 = vector.extract_strided_slice %42 {offsets = [0, 0, 0], sizes = [4, 8, 8], strides = [1, 1, 1]} : vector<12x8x8xf32> to vector<4x8x8xf32>
    %44 = vector.extract_strided_slice %42 {offsets = [4, 0, 0], sizes = [4, 8, 8], strides = [1, 1, 1]} : vector<12x8x8xf32> to vector<4x8x8xf32>
    %45 = vector.extract_strided_slice %42 {offsets = [8, 0, 0], sizes = [4, 8, 8], strides = [1, 1, 1]} : vector<12x8x8xf32> to vector<4x8x8xf32>
    "tpu.trace_start"() <{level = 10 : i32, message = "hld,hmd->hlm"}> : () -> ()
    %cst_34 = arith.constant dense<0.000000e+00> : vector<4x8x8xf32>
    %46 = tpu.matmul %43, %44, %cst_34 {dimension_numbers = #tpu.dot_dimension_numbers<[2], [2], [1], [1], [0, 0, 0, 1, 1, 1], [0], [0]>} : vector<4x8x8xf32>, vector<4x8x8xf32>, vector<4x8x8xf32> -> vector<4x8x8xf32>
    "tpu.trace_stop"() : () -> ()
    %47 = vector.extract_strided_slice %36 {offsets = [0, 0, 0, 0], sizes = [1, 4, 8, 8], strides = [1, 1, 1, 1]} : vector<2x4x8x8xf32> to vector<1x4x8x8xf32>
    %48 = vector.shape_cast %47 : vector<1x4x8x8xf32> to vector<4x8x8xf32>
    %49 = arith.mulf %46, %48 : vector<4x8x8xf32>
    %cst_35 = arith.constant dense<0xFF800000> : vector<4x8xf32>
    %50 = vector.multi_reduction <maximumf>, %49, %cst_35 [2] : vector<4x8x8xf32> to vector<4x8xf32>
    %51 = vector.shape_cast %50 : vector<4x8xf32> to vector<4x8x1xf32>
    %52 = vector.broadcast %51 : vector<4x8x1xf32> to vector<4x8x8xf32>
    %53 = arith.subf %49, %52 : vector<4x8x8xf32>
    %54 = math.exp %53 : vector<4x8x8xf32>
    %cst_36 = arith.constant dense<0.000000e+00> : vector<4x8xf32>
    %55 = vector.multi_reduction <add>, %54, %cst_36 [2] : vector<4x8x8xf32> to vector<4x8xf32>
    %56 = vector.shape_cast %55 : vector<4x8xf32> to vector<4x8x1xf32>
    %57 = tpu.reciprocal %56 {approx = true} : vector<4x8x1xf32> -> vector<4x8x1xf32>
    %58 = vector.broadcast %57 : vector<4x8x1xf32> to vector<4x8x8xf32>
    %59 = arith.mulf %54, %58 : vector<4x8x8xf32>
    %c0_37 = arith.constant 0 : index
    %c0_38 = arith.constant 0 : index
    %c0_39 = arith.constant 0 : index
    %c0_40 = arith.constant 0 : index
    %60 = vector.load %arg14[%c0_37, %c0_38, %c0_39, %c0_40] : memref<2x4x8x8xf32, #tpu.memory_space<vmem>>, vector<1x4x8x8xf32>
    %61 = vector.shape_cast %60 : vector<1x4x8x8xf32> to vector<4x8x8xf32>
    %62 = vector.shape_cast %59 : vector<4x8x8xf32> to vector<1x4x8x8xf32>
    tpu.vector_store %arg14[%c0_37, %c0_38, %c0_39, %c0_40], %62 {strides = array<i32>} : memref<2x4x8x8xf32, #tpu.memory_space<vmem>>, vector<1x4x8x8xf32>,
    "tpu.trace_start"() <{level = 10 : i32, message = "hlm,hmd->hld"}> : () -> ()
    %cst_41 = arith.constant dense<0.000000e+00> : vector<4x8x8xf32>
    %63 = tpu.matmul %59, %45, %cst_41 {dimension_numbers = #tpu.dot_dimension_numbers<[2], [1], [1], [2], [0, 0, 0, 1, 1, 2], [0], [0]>} : vector<4x8x8xf32>, vector<4x8x8xf32>, vector<4x8x8xf32> -> vector<4x8x8xf32>
    "tpu.trace_stop"() : () -> ()
    "tpu.trace_start"() <{level = 10 : i32, message = "hld,hdk->hlk"}> : () -> ()
    %cst_42 = arith.constant dense<0.000000e+00> : vector<4x8x32xf32>
    %64 = tpu.matmul %63, %10, %cst_42 {dimension_numbers = #tpu.dot_dimension_numbers<[2], [1], [1], [2], [0, 0, 0, 1, 1, 2], [0], [0]>} : vector<4x8x8xf32>, vector<4x8x32xf32>, vector<4x8x32xf32> -> vector<4x8x32xf32>
    "tpu.trace_stop"() : () -> ()
    %cst_43 = arith.constant dense<0.000000e+00> : vector<8x32xf32>
    %65 = vector.multi_reduction <add>, %64, %cst_43 [0] : vector<4x8x32xf32> to vector<8x32xf32>
    %66 = vector.extract_strided_slice %0 {offsets = [8, 0], sizes = [8, 32], strides = [1, 1]} : vector<16x32xf32> to vector<8x32xf32>
    %67 = vector.shape_cast %66 : vector<8x32xf32> to vector<1x8x32xf32>
    %68 = vector.broadcast %67 : vector<1x8x32xf32> to vector<12x8x32xf32>
    "tpu.trace_start"() <{level = 10 : i32, message = "hld,hdk->hlk"}> : () -> ()
    %cst_44 = arith.constant dense<0.000000e+00> : vector<12x8x8xf32>
    %69 = tpu.matmul %68, %8, %cst_44 {dimension_numbers = #tpu.dot_dimension_numbers<[2], [1], [1], [2], [0, 0, 0, 1, 1, 2], [0], [0]>} : vector<12x8x32xf32>, vector<12x32x8xf32>, vector<12x8x8xf32> -> vector<12x8x8xf32>
    "tpu.trace_stop"() : () -> ()
    %70 = vector.broadcast %9 : vector<12x1x8xf32> to vector<12x8x8xf32>
    %71 = arith.addf %69, %70 : vector<12x8x8xf32>
    %72 = vector.extract_strided_slice %71 {offsets = [0, 0, 0], sizes = [4, 8, 8], strides = [1, 1, 1]} : vector<12x8x8xf32> to vector<4x8x8xf32>
    %73 = vector.extract_strided_slice %71 {offsets = [4, 0, 0], sizes = [4, 8, 8], strides = [1, 1, 1]} : vector<12x8x8xf32> to vector<4x8x8xf32>
    %74 = vector.extract_strided_slice %71 {offsets = [8, 0, 0], sizes = [4, 8, 8], strides = [1, 1, 1]} : vector<12x8x8xf32> to vector<4x8x8xf32>
    "tpu.trace_start"() <{level = 10 : i32, message = "hld,hmd->hlm"}> : () -> ()
    %cst_45 = arith.constant dense<0.000000e+00> : vector<4x8x8xf32>
    %75 = tpu.matmul %72, %73, %cst_45 {dimension_numbers = #tpu.dot_dimension_numbers<[2], [2], [1], [1], [0, 0, 0, 1, 1, 1], [0], [0]>} : vector<4x8x8xf32>, vector<4x8x8xf32>, vector<4x8x8xf32> -> vector<4x8x8xf32>
    "tpu.trace_stop"() : () -> ()
    %76 = vector.extract_strided_slice %36 {offsets = [1, 0, 0, 0], sizes = [1, 4, 8, 8], strides = [1, 1, 1, 1]} : vector<2x4x8x8xf32> to vector<1x4x8x8xf32>
    %77 = vector.shape_cast %76 : vector<1x4x8x8xf32> to vector<4x8x8xf32>
    %78 = arith.mulf %75, %77 : vector<4x8x8xf32>
    %cst_46 = arith.constant dense<0xFF800000> : vector<4x8xf32>
    %79 = vector.multi_reduction <maximumf>, %78, %cst_46 [2] : vector<4x8x8xf32> to vector<4x8xf32>
    %80 = vector.shape_cast %79 : vector<4x8xf32> to vector<4x8x1xf32>
    %81 = vector.broadcast %80 : vector<4x8x1xf32> to vector<4x8x8xf32>
    %82 = arith.subf %78, %81 : vector<4x8x8xf32>
    %83 = math.exp %82 : vector<4x8x8xf32>
    %cst_47 = arith.constant dense<0.000000e+00> : vector<4x8xf32>
    %84 = vector.multi_reduction <add>, %83, %cst_47 [2] : vector<4x8x8xf32> to vector<4x8xf32>
    %85 = vector.shape_cast %84 : vector<4x8xf32> to vector<4x8x1xf32>
    %86 = tpu.reciprocal %85 {approx = true} : vector<4x8x1xf32> -> vector<4x8x1xf32>
    %87 = vector.broadcast %86 : vector<4x8x1xf32> to vector<4x8x8xf32>
    %88 = arith.mulf %83, %87 : vector<4x8x8xf32>
    %c1_48 = arith.constant 1 : index
    %c0_49 = arith.constant 0 : index
    %c0_50 = arith.constant 0 : index
    %c0_51 = arith.constant 0 : index
    %89 = vector.load %arg14[%c1_48, %c0_49, %c0_50, %c0_51] : memref<2x4x8x8xf32, #tpu.memory_space<vmem>>, vector<1x4x8x8xf32>
    %90 = vector.shape_cast %89 : vector<1x4x8x8xf32> to vector<4x8x8xf32>
    %91 = vector.shape_cast %88 : vector<4x8x8xf32> to vector<1x4x8x8xf32>
    tpu.vector_store %arg14[%c1_48, %c0_49, %c0_50, %c0_51], %91 {strides = array<i32>} : memref<2x4x8x8xf32, #tpu.memory_space<vmem>>, vector<1x4x8x8xf32>,
    "tpu.trace_start"() <{level = 10 : i32, message = "hlm,hmd->hld"}> : () -> ()
    %cst_52 = arith.constant dense<0.000000e+00> : vector<4x8x8xf32>
    %92 = tpu.matmul %88, %74, %cst_52 {dimension_numbers = #tpu.dot_dimension_numbers<[2], [1], [1], [2], [0, 0, 0, 1, 1, 2], [0], [0]>} : vector<4x8x8xf32>, vector<4x8x8xf32>, vector<4x8x8xf32> -> vector<4x8x8xf32>
    "tpu.trace_stop"() : () -> ()
    "tpu.trace_start"() <{level = 10 : i32, message = "hld,hdk->hlk"}> : () -> ()
    %cst_53 = arith.constant dense<0.000000e+00> : vector<4x8x32xf32>
    %93 = tpu.matmul %92, %10, %cst_53 {dimension_numbers = #tpu.dot_dimension_numbers<[2], [1], [1], [2], [0, 0, 0, 1, 1, 2], [0], [0]>} : vector<4x8x8xf32>, vector<4x8x32xf32>, vector<4x8x32xf32> -> vector<4x8x32xf32>
    "tpu.trace_stop"() : () -> ()
    %cst_54 = arith.constant dense<0.000000e+00> : vector<8x32xf32>
    %94 = vector.multi_reduction <add>, %93, %cst_54 [0] : vector<4x8x32xf32> to vector<8x32xf32>
    %95 = tpu.concatenate %65, %94 in 0 : vector<8x32xf32>, vector<8x32xf32> -> vector<16x32xf32>
    %96 = vector.broadcast %2 : vector<1x32xf32> to vector<16x32xf32>
    %97 = arith.addf %95, %96 : vector<16x32xf32>
    %cst_55 = arith.constant dense<0.000000e+00> : vector<16xf32>
    %98 = vector.multi_reduction <add>, %97, %cst_55 [1] : vector<16x32xf32> to vector<16xf32>
    %99 = vector.shape_cast %98 : vector<16xf32> to vector<16x1xf32>
    %cst_56 = arith.constant 3.200000e+01 : f32
    %100 = vector.broadcast %cst_56 : f32 to vector<16x1xf32>
    %101 = arith.divf %99, %100 : vector<16x1xf32>
    %102 = vector.broadcast %101 : vector<16x1xf32> to vector<16x32xf32>
    %103 = arith.subf %97, %102 : vector<16x32xf32>
    %104 = arith.mulf %103, %103 : vector<16x32xf32>
    %cst_57 = arith.constant dense<0.000000e+00> : vector<16xf32>
    %105 = vector.multi_reduction <add>, %104, %cst_57 [1] : vector<16x32xf32> to vector<16xf32>
    %106 = vector.shape_cast %105 : vector<16xf32> to vector<16x1xf32>
    %cst_58 = arith.constant 3.200000e+01 : f32
    %107 = vector.broadcast %cst_58 : f32 to vector<16x1xf32>
    %108 = arith.divf %106, %107 : vector<16x1xf32>
    %109 = vector.broadcast %101 : vector<16x1xf32> to vector<16x32xf32>
    %110 = arith.subf %97, %109 : vector<16x32xf32>
    %cst_59 = arith.constant 9.99999974E-6 : f32
    %111 = vector.broadcast %cst_59 : f32 to vector<16x1xf32>
    %112 = arith.addf %108, %111 : vector<16x1xf32>
    %113 = math.rsqrt %112 : vector<16x1xf32>
    %114 = vector.broadcast %113 : vector<16x1xf32> to vector<16x32xf32>
    %115 = arith.mulf %110, %114 : vector<16x32xf32>
    %116 = vector.broadcast %3 : vector<1x32xf32> to vector<16x32xf32>
    %117 = arith.mulf %115, %116 : vector<16x32xf32>
    %118 = vector.broadcast %4 : vector<1x32xf32> to vector<16x32xf32>
    %119 = arith.addf %117, %118 : vector<16x32xf32>
    %120 = arith.addf %0, %119 : vector<16x32xf32>
    %c0_60 = arith.constant 0 : index
    %c0_61 = arith.constant 0 : index
    %121 = vector.load %arg10[%c0_60, %c0_61] : memref<32x64xf32, #tpu.memory_space<vmem>>, vector<32x64xf32>
    %cst_62 = arith.constant dense<0.000000e+00> : vector<16x64xf32>
    %122 = tpu.matmul %120, %121, %cst_62 {dimension_numbers = #tpu.dot_dimension_numbers<[1], [0], [0], [1], [0, 0, 1, 1], [], []>} : vector<16x32xf32>, vector<32x64xf32>, vector<16x64xf32> -> vector<16x64xf32>
    %c0_63 = arith.constant 0 : index
    %c0_64 = arith.constant 0 : index
    %123 = vector.load %arg11[%c0_63, %c0_64] : memref<1x64xf32, #tpu.memory_space<vmem>>, vector<1x64xf32>
    %124 = vector.broadcast %123 : vector<1x64xf32> to vector<16x64xf32>
    %125 = arith.addf %122, %124 : vector<16x64xf32>
    %cst_65 = arith.constant 5.000000e-01 : f32
    %126 = vector.broadcast %cst_65 : f32 to vector<16x64xf32>
    %127 = arith.mulf %126, %125 : vector<16x64xf32>
    %cst_66 = arith.constant 2.000000e+00 : f32
    %128 = math.sqrt %cst_66 : f32
    %129 = vector.broadcast %128 : f32 to vector<16x64xf32>
    %130 = arith.divf %125, %129 : vector<16x64xf32>
    %131 = math.erf %130 : vector<16x64xf32>
    %cst_67 = arith.constant 1.000000e+00 : f32
    %132 = vector.broadcast %cst_67 : f32 to vector<16x64xf32>
    %133 = arith.addf %132, %131 : vector<16x64xf32>
    %134 = arith.mulf %127, %133 : vector<16x64xf32>
    %c0_68 = arith.constant 0 : index
    %c0_69 = arith.constant 0 : index
    %135 = vector.load %arg12[%c0_68, %c0_69] : memref<64x32xf32, #tpu.memory_space<vmem>>, vector<64x32xf32>
    %cst_70 = arith.constant dense<0.000000e+00> : vector<16x32xf32>
    %136 = tpu.matmul %134, %135, %cst_70 {dimension_numbers = #tpu.dot_dimension_numbers<[1], [0], [0], [1], [0, 0, 1, 1], [], []>} : vector<16x64xf32>, vector<64x32xf32>, vector<16x32xf32> -> vector<16x32xf32>
    %137 = vector.broadcast %7 : vector<1x32xf32> to vector<16x32xf32>
    %138 = arith.addf %136, %137 : vector<16x32xf32>
    %cst_71 = arith.constant dense<0.000000e+00> : vector<16xf32>
    %139 = vector.multi_reduction <add>, %138, %cst_71 [1] : vector<16x32xf32> to vector<16xf32>
    %140 = vector.shape_cast %139 : vector<16xf32> to vector<16x1xf32>
    %cst_72 = arith.constant 3.200000e+01 : f32
    %141 = vector.broadcast %cst_72 : f32 to vector<16x1xf32>
    %142 = arith.divf %140, %141 : vector<16x1xf32>
    %143 = vector.broadcast %142 : vector<16x1xf32> to vector<16x32xf32>
    %144 = arith.subf %138, %143 : vector<16x32xf32>
    %145 = arith.mulf %144, %144 : vector<16x32xf32>
    %cst_73 = arith.constant dense<0.000000e+00> : vector<16xf32>
    %146 = vector.multi_reduction <add>, %145, %cst_73 [1] : vector<16x32xf32> to vector<16xf32>
    %147 = vector.shape_cast %146 : vector<16xf32> to vector<16x1xf32>
    %cst_74 = arith.constant 3.200000e+01 : f32
    %148 = vector.broadcast %cst_74 : f32 to vector<16x1xf32>
    %149 = arith.divf %147, %148 : vector<16x1xf32>
    %150 = vector.broadcast %142 : vector<16x1xf32> to vector<16x32xf32>
    %151 = arith.subf %138, %150 : vector<16x32xf32>
    %cst_75 = arith.constant 9.99999974E-6 : f32
    %152 = vector.broadcast %cst_75 : f32 to vector<16x1xf32>
    %153 = arith.addf %149, %152 : vector<16x1xf32>
    %154 = math.rsqrt %153 : vector<16x1xf32>
    %155 = vector.broadcast %154 : vector<16x1xf32> to vector<16x32xf32>
    %156 = arith.mulf %151, %155 : vector<16x32xf32>
    %157 = vector.broadcast %5 : vector<1x32xf32> to vector<16x32xf32>
    %158 = arith.mulf %156, %157 : vector<16x32xf32>
    %159 = vector.broadcast %6 : vector<1x32xf32> to vector<16x32xf32>
    %160 = arith.addf %158, %159 : vector<16x32xf32>
    %161 = arith.addf %120, %160 : vector<16x32xf32>
    %c0_76 = arith.constant 0 : index
    %c0_77 = arith.constant 0 : index
    %162 = vector.load %arg13[%c0_76, %c0_77] : memref<16x32xf32, #tpu.memory_space<vmem>>, vector<16x32xf32>
    tpu.vector_store %arg13[%c0_76, %c0_77], %161 {strides = array<i32>} : memref<16x32xf32, #tpu.memory_space<vmem>>, vector<16x32xf32>,
    return
  }
  func.func @transform_0(%arg0: i32) -> (i32, i32) {
    %c0_i32 = arith.constant 0 : i32
    %c0_i32_0 = arith.constant 0 : i32
    %c0_i32_1 = arith.constant 0 : i32
    return %c0_i32, %c0_i32_0 : i32, i32
  }
  func.func @transform_1(%arg0: i32) -> (i32, i32, i32, i32) {
    %c0_i32 = arith.constant 0 : i32
    %c0_i32_0 = arith.constant 0 : i32
    %c0_i32_1 = arith.constant 0 : i32
    %c0_i32_2 = arith.constant 0 : i32
    %c0_i32_3 = arith.constant 0 : i32
    return %c0_i32, %c0_i32_0, %c0_i32_1, %c0_i32_2 : i32, i32, i32, i32
  }
  func.func @transform_2(%arg0: i32) -> (i32, i32, i32, i32) {
    %c0_i32 = arith.constant 0 : i32
    %c0_i32_0 = arith.constant 0 : i32
    %c0_i32_1 = arith.constant 0 : i32
    %c0_i32_2 = arith.constant 0 : i32
    %c0_i32_3 = arith.constant 0 : i32
    return %c0_i32, %c0_i32_0, %c0_i32_1, %c0_i32_2 : i32, i32, i32, i32
  }
  func.func @transform_3(%arg0: i32) -> (i32, i32, i32, i32) {
    %c0_i32 = arith.constant 0 : i32
    %c0_i32_0 = arith.constant 0 : i32
    %c0_i32_1 = arith.constant 0 : i32
    %c0_i32_2 = arith.constant 0 : i32
    %c0_i32_3 = arith.constant 0 : i32
    return %c0_i32, %c0_i32_0, %c0_i32_1, %c0_i32_2 : i32, i32, i32, i32
  }
  func.func @transform_4(%arg0: i32) -> (i32, i32, i32) {
    %c0_i32 = arith.constant 0 : i32
    %c0_i32_0 = arith.constant 0 : i32
    %c0_i32_1 = arith.constant 0 : i32
    %c0_i32_2 = arith.constant 0 : i32
    return %c0_i32, %c0_i32_0, %c0_i32_1 : i32, i32, i32
  }
  func.func @transform_5(%arg0: i32) -> (i32, i32, i32) {
    %c0_i32 = arith.constant 0 : i32
    %c0_i32_0 = arith.constant 0 : i32
    %c0_i32_1 = arith.constant 0 : i32
    %c0_i32_2 = arith.constant 0 : i32
    return %c0_i32, %c0_i32_0, %c0_i32_1 : i32, i32, i32
  }
  func.func @transform_6(%arg0: i32) -> (i32, i32, i32) {
    %c0_i32 = arith.constant 0 : i32
    %c0_i32_0 = arith.constant 0 : i32
    %c0_i32_1 = arith.constant 0 : i32
    %c0_i32_2 = arith.constant 0 : i32
    return %c0_i32, %c0_i32_0, %c0_i32_1 : i32, i32, i32
  }
  func.func @transform_7(%arg0: i32) -> (i32, i32, i32, i32) {
    %c0_i32 = arith.constant 0 : i32
    %c0_i32_0 = arith.constant 0 : i32
    %c0_i32_1 = arith.constant 0 : i32
    %c0_i32_2 = arith.constant 0 : i32
    %c0_i32_3 = arith.constant 0 : i32
    return %c0_i32, %c0_i32_0, %c0_i32_1, %c0_i32_2 : i32, i32, i32, i32
  }
  func.func @transform_8(%arg0: i32) -> (i32, i32) {
    %c0_i32 = arith.constant 0 : i32
    %c0_i32_0 = arith.constant 0 : i32
    %c0_i32_1 = arith.constant 0 : i32
    return %c0_i32, %c0_i32_0 : i32, i32
  }
  func.func @transform_9(%arg0: i32) -> (i32, i32) {
    %c0_i32 = arith.constant 0 : i32
    %c0_i32_0 = arith.constant 0 : i32
    %c0_i32_1 = arith.constant 0 : i32
    return %c0_i32, %c0_i32_0 : i32, i32
  }
  func.func @transform_10(%arg0: i32) -> (i32, i32) {
    %c0_i32 = arith.constant 0 : i32
    %c0_i32_0 = arith.constant 0 : i32
    %c0_i32_1 = arith.constant 0 : i32
    return %c0_i32, %c0_i32_0 : i32, i32
  }
  func.func @transform_11(%arg0: i32) -> (i32, i32) {
    %c0_i32 = arith.constant 0 : i32
    %c0_i32_0 = arith.constant 0 : i32
    %c0_i32_1 = arith.constant 0 : i32
    return %c0_i32, %c0_i32_0 : i32, i32
  }
  func.func @transform_12(%arg0: i32) -> (i32, i32) {
    %c0_i32 = arith.constant 0 : i32
    %c0_i32_0 = arith.constant 0 : i32
    %c0_i32_1 = arith.constant 0 : i32
    return %c0_i32, %c0_i32_0 : i32, i32
  }
  func.func @transform_13(%arg0: i32) -> (i32, i32, i32, i32) {
    %c0_i32 = arith.constant 0 : i32
    %c0_i32_0 = arith.constant 0 : i32
    %c0_i32_1 = arith.constant 0 : i32
    %c0_i32_2 = arith.constant 0 : i32
    %c0_i32_3 = arith.constant 0 : i32
    return %c0_i32, %c0_i32_0, %c0_i32_1, %c0_i32_2 : i32, i32, i32, i32
  }
}

</mosaic_0001>

<bundles_post_ra>
// kernel: tpu_custom_call.1
= control target key start
LH: loop header
LB: loop body
LE: loop exit
PB: predicated region body
PF: predicated region fallthrough
CT: control target
= control target key end

     0   :  { %19 = vsyncpa [#allocation3], 0  ;;  %v6146_v3 = vmov 0.0|0.0   ;;  %vm5195_vm0 = vmmov 0   ;;  %v6150_v11 = vmov 0.0   ;;  %vm337_vm1 = vcmask 261120   ;;  %s6132_s0 = inlined_call_operand.vmem [shape: f32[16,32], index: 0, kind: input, shape index: {}]   ;;  %s6133_s1 = inlined_call_operand.vmem [shape: f32[2,1,1,8], index: 1, kind: input, shape index: {}]   ;;  %s6134_s2 = inlined_call_operand.vmem [shape: f32[2,1,8,8], index: 2, kind: input, shape index: {}]   ;;  %s6135_s3 = inlined_call_operand.vmem [shape: f32[2,1,8,8], index: 3, kind: input, shape index: {}]   ;;  %s6136_s4 = inlined_call_operand.vmem [shape: f32[12,32,8], index: 4, kind: input, shape index: {}]   ;;  %s6137_s5 = inlined_call_operand.vmem [shape: f32[12,1,8], index: 5, kind: input, shape index: {}]   ;;  %s6138_s6 = inlined_call_operand.vmem [shape: f32[4,8,32], index: 6, kind: input, shape index: {}]   ;;  %s6139_s7 = inlined_call_operand.vmem [shape: f32[2,4,1,1], index: 7, kind: input, shape index: {}]   ;;  %s6140_s8 = inlined_call_operand.vmem [shape: f32[6,32], index: 8, kind: input, shape index: {}]   ;;  %s6141_s9 = inlined_call_operand.vmem [shape: f32[32,64], index: 9, kind: input, shape index: {}]   ;;  %s6142_s10 = inlined_call_operand.vmem [shape: f32[1,64], index: 10, kind: input, shape index: {}]   ;;  %s6143_s11 = inlined_call_operand.vmem [shape: f32[64,32], index: 11, kind: input, shape index: {}]   ;;  %s6144_s12 = inlined_call_operand.hbm [shape: f32[16,32], index: 12, kind: output, shape index: {0}]   ;;  %s6145_s13 = inlined_call_operand.hbm [shape: f32[2,4,8,8], index: 13, kind: output, shape index: {1}]  }
   0x1   :  { %v48_v0 = vld [vmem:[%s6136_s4] sm:$0xff]  ;;  %v49_v1 = vld [vmem:[%s6136_s4 + $0x8] sm:$0xff]  ;;  %4923 = vmatprep.subr.bf16.mxu0 %v6146_v3  ;;  %4929 = vmatprep.subr.bf16.mxu1 %v6146_v3  ;;  %v50_v6 = vld [vmem:[%s6136_s4 + $0x10] sm:$0xff] }
   0x2   :  { %v52_v2 = vld [vmem:[%s6136_s4 + $0x20] sm:$0xff]  ;;  %v5283_v4 = vpack.c.bf16 %v49_v1, %v48_v0  ;;  %v53_v5 = vld [vmem:[%s6136_s4 + $0x28] sm:$0xff]  ;;  %v51_v7 = vld [vmem:[%s6136_s4 + $0x18] sm:$0xff]  ;;  %4517 = vmatprep.mubr.msk.f32.mxu0 %vm5195_vm0, %v6150_v11  ;;  %4528 = vmatprep.mubr.msk.f32.mxu1 %vm5195_vm0, %v6150_v11 }
   0x3   :  { %v5294_v8 = vpack.c.bf16 %v53_v5, %v52_v2  ;;  %v54_v9 = vld [vmem:[%s6136_s4 + $0x30] sm:$0xff]  ;;  %v55_v10 = vld [vmem:[%s6136_s4 + $0x38] sm:$0xff]  ;;  %v5307_v12 = vpack.c.bf16 %v51_v7, %v50_v6  ;;  %v56_v14 = vld [vmem:[%s6136_s4 + $0x40] sm:$0xff] }
   0x4   :  { %4925 = vmatpush3.bf16.msra.mxu0 %v5283_v4  ;;  %v5311_v13 = vpack.c.bf16 %v55_v10, %v54_v9  ;;  %v57_v15 = vld [vmem:[%s6136_s4 + $0x48] sm:$0xff]  ;;  %v60_v16 = vld [vmem:[%s6136_s4 + $0x60] sm:$0xff]  ;;  %v58_v21 = vld [vmem:[%s6136_s4 + $0x50] sm:$0xff] }
   0x5   :  { %4931 = vmatpush3.bf16.msra.mxu1 %v5294_v8  ;;  %4926 = vmatprep.subr.bf16.mxu0 %v6146_v3  ;;  %v61_v17 = vld [vmem:[%s6136_s4 + $0x68] sm:$0xff]  ;;  %v5330_v18 = vld [vmem:[%s6132_s0] sm:$0xff]  ;;  %v5332_v19 = vpack.c.bf16 %v57_v15, %v56_v14  ;;  %v59_v22 = vld [vmem:[%s6136_s4 + $0x58] sm:$0xff] }
   0x6   :  { %4932 = vmatprep.subr.bf16.mxu1 %v6146_v3  ;;  %v5336_v20 = vpack.c.bf16 %v61_v17, %v60_v16  ;;  %v62_v23 = vld [vmem:[%s6136_s4 + $0x70] sm:$0xff]  ;;  %v63_v24 = vld [vmem:[%s6136_s4 + $0x78] sm:$0xff]  ;;  %v5356_v25 = vpack.c.bf16 %v59_v22, %v58_v21  ;;  %v64_v27 = vld [vmem:[%s6136_s4 + $0x80] sm:$0xff] }
   0x7   :  { %v5360_v26 = vpack.c.bf16 %v63_v24, %v62_v23  ;;  %v65_v28 = vld [vmem:[%s6136_s4 + $0x88] sm:$0xff] }
   0x8   :  { %4928 = vmatpush3.bf16.msra.mxu0 %v5307_v12 }
   0x9   :  { %4934 = vmatpush3.bf16.msra.mxu1 %v5311_v13  ;;  %4935 = vmatprep.subr.bf16.mxu0 %v6146_v3 }
   0xa   :  { %4941 = vmatprep.subr.bf16.mxu1 %v6146_v3 }
   0xb   :  { %4518 = vmatmul.mubr.msk.f32.vlgmr.msra.gmra.mrb[0].mxu0 %vm337_vm1, %v5330_v18 }
   0xc   :  { %4529 = vmatmul.mubr.msk.f32.vlgmr.msra.gmra.mrb[0].mxu1 %vm337_vm1, %v5330_v18  ;;  %4937 = vmatpush3.bf16.msra.mxu0 %v5332_v19 }
   0xd   :  { %4943 = vmatpush3.bf16.msra.mxu1 %v5336_v20  ;;  %4938 = vmatprep.subr.bf16.mxu0 %v6146_v3 }
   0xe   :  { %20 = vsyncpa [#allocation5], 0  ;;  %4944 = vmatprep.subr.bf16.mxu1 %v6146_v3  ;;  %4539 = vmatprep.mubr.msk.f32.mxu0 %vm5195_vm0, %v6150_v11  ;;  %v68_v29 = vld [vmem:[%s6136_s4 + $0xa0] sm:$0xff]  ;;  %v69_v30 = vld [vmem:[%s6136_s4 + $0xa8] sm:$0xff]  ;;  %v5380_v31 = vpack.c.bf16 %v65_v28, %v64_v27  ;;  %v5197_v22 = vmov 0   ;;  %vm1181_vm2 = vcmask 64512  }
   0xf   :  { %4550 = vmatprep.mubr.msk.f32.mxu1 %vm5195_vm0, %v6150_v11  ;;  %v5384_v32 = vpack.c.bf16 %v69_v30, %v68_v29  ;;  %v66_v33 = vld [vmem:[%s6136_s4 + $0x90] sm:$0xff]  ;;  %v67_v34 = vld [vmem:[%s6136_s4 + $0x98] sm:$0xff]  ;;  %v72_v39 = vld [vmem:[%s6136_s4 + $0xc0] sm:$0xff]  ;;  %5099 = vset.pattern.permute.xlu0 %v5197_v22  ;;  %vm4082_vm5 = vcmask 523264  }
  0x10   :  { %4940 = vmatpush3.bf16.msra.mxu0 %v5356_v25  ;;  %v70_v35 = vld [vmem:[%s6136_s4 + $0xb0] sm:$0xff]  ;;  %v71_v36 = vld [vmem:[%s6136_s4 + $0xb8] sm:$0xff]  ;;  %v5404_v37 = vpack.c.bf16 %v67_v34, %v66_v33  ;;  %v73_v40 = vld [vmem:[%s6136_s4 + $0xc8] sm:$0xff]  ;;  %5100 = vset.pattern.permute.xlu1 %v5197_v22 }
  0x11   :  { %4946 = vmatpush3.bf16.msra.mxu1 %v5360_v26  ;;  %4947 = vmatprep.subr.bf16.mxu0 %v6146_v3  ;;  %v5408_v38 = vpack.c.bf16 %v71_v36, %v70_v35  ;;  %v76_v41 = vld [vmem:[%s6136_s4 + $0xe0] sm:$0xff]  ;;  %v77_v42 = vld [vmem:[%s6136_s4 + $0xe8] sm:$0xff]  ;;  %v5428_v43 = vpack.c.bf16 %v73_v40, %v72_v39  ;;  %v74_v45 = vld [vmem:[%s6136_s4 + $0xd0] sm:$0xff] }
  0x12   :  { %4953 = vmatprep.subr.bf16.mxu1 %v6146_v3  ;;  %v5432_v44 = vpack.c.bf16 %v77_v42, %v76_v41  ;;  %v75_v46 = vld [vmem:[%s6136_s4 + $0xd8] sm:$0xff]  ;;  %v78_v47 = vld [vmem:[%s6136_s4 + $0xf0] sm:$0xff]  ;;  %v80_v51 = vld [vmem:[%s6136_s4 + $0x100] sm:$0xff] }
  0x13   :  { %4540 = vmatmul.mubr.msk.f32.vlgmr.msra.gmra.mrb[2].mxu0 %vm337_vm1, %v5330_v18  ;;  %v79_v48 = vld [vmem:[%s6136_s4 + $0xf8] sm:$0xff]  ;;  %v5452_v49 = vpack.c.bf16 %v75_v46, %v74_v45  ;;  %v81_v52 = vld [vmem:[%s6136_s4 + $0x108] sm:$0xff]  ;;  %v82_v54 = vld [vmem:[%s6136_s4 + $0x110] sm:$0xff] }
  0x14   :  { %4551 = vmatmul.mubr.msk.f32.vlgmr.msra.gmra.mrb[2].mxu1 %vm337_vm1, %v5330_v18  ;;  %4949 = vmatpush3.bf16.msra.mxu0 %v5380_v31  ;;  %v5456_v50 = vpack.c.bf16 %v79_v48, %v78_v47  ;;  %v5470_v53 = vpack.c.bf16 %v81_v52, %v80_v51  ;;  %v83_v55 = vld [vmem:[%s6136_s4 + $0x118] sm:$0xff]  ;;  %v84_v57 = vld [vmem:[%s6136_s4 + $0x120] sm:$0xff]  ;;  %v85_v58 = vld [vmem:[%s6136_s4 + $0x128] sm:$0xff] }
  0x15   :  { %4955 = vmatpush3.bf16.msra.mxu1 %v5384_v32  ;;  %4950 = vmatprep.subr.bf16.mxu0 %v6146_v3  ;;  %v5491_v56 = vpack.c.bf16 %v83_v55, %v82_v54  ;;  %v88_v59 = vld [vmem:[%s6136_s4 + $0x140] sm:$0xff]  ;;  %v5503_v60 = vpack.c.bf16 %v85_v58, %v84_v57  ;;  %v89_v61 = vld [vmem:[%s6136_s4 + $0x148] sm:$0xff]  ;;  %v86_v63 = vld [vmem:[%s6136_s4 + $0x130] sm:$0xff] }
  0x16   :  { %4956 = vmatprep.subr.bf16.mxu1 %v6146_v3  ;;  %4561 = vmatprep.mubr.msk.f32.mxu0 %vm5195_vm0, %v6150_v11  ;;  %v5509_v62 = vpack.c.bf16 %v89_v61, %v88_v59  ;;  %v87_v0 = vld [vmem:[%s6136_s4 + $0x138] sm:$0xff]  ;;  %v90_v1 = vld [vmem:[%s6136_s4 + $0x150] sm:$0xff]  ;;  %v92_v7 = vld [vmem:[%s6136_s4 + $0x160] sm:$0xff] }
  0x17   :  { %4572 = vmatprep.mubr.msk.f32.mxu1 %vm5195_vm0, %v6150_v11  ;;  %v5528_v2 = vpack.c.bf16 %v87_v0, %v86_v63  ;;  %v91_v5 = vld [vmem:[%s6136_s4 + $0x158] sm:$0xff]  ;;  %v93_v9 = vld [vmem:[%s6136_s4 + $0x168] sm:$0xff]  ;;  %v94_v14 = vld [vmem:[%s6136_s4 + $0x170] sm:$0xff] }
  0x18   :  { %4952 = vmatpush3.bf16.msra.mxu0 %v5404_v37  ;;  %v5533_v6 = vpack.c.bf16 %v91_v5, %v90_v1  ;;  %v5542_v10 = vpack.c.bf16 %v93_v9, %v92_v7  ;;  %v95_v15 = vld [vmem:[%s6136_s4 + $0x178] sm:$0xff]  ;;  %v4244_v17 = vld [vmem:[%s6139_s7] ss:$0 sm:$0xff]  ;;  %v4248_v21 = vld [vmem:[%s6139_s7 + $0x4] ss:$0 sm:$0xff] }
  0x19   :  { %4958 = vmatpush3.bf16.msra.mxu1 %v5408_v38  ;;  %4959 = vmatprep.subr.bf16.mxu0 %v6146_v3  ;;  %v5561_v16 = vpack.c.bf16 %v95_v15, %v94_v14  ;;  %v4246_v23 = vld [vmem:[%s6139_s7 + $0x2] ss:$0 sm:$0xff]  ;;  %v4249_v24 = vld [vmem:[%s6139_s7 + $0x5] ss:$0 sm:$0xff]  ;;  %v4247_v27 = vld [vmem:[%s6139_s7 + $0x3] ss:$0 sm:$0xff] }
  0x1a   :  { %4965 = vmatprep.subr.bf16.mxu1 %v6146_v3  ;;  %152 = vperm.xlu0 %5099, %v4244_v17   ;;  %v4250_v28 = vld [vmem:[%s6139_s7 + $0x6] ss:$0 sm:$0xff]  ;;  %v4251_v29 = vld [vmem:[%s6139_s7 + $0x7] ss:$0 sm:$0xff]  ;;  %v5598_v42 = vld [vmem:[%s6137_s5 + $0x4] ss:$0 sm:$0xff] }
  0x1b   :  { %4562 = vmatmul.mubr.msk.f32.vlgmr.msra.gmra.mrb[4].mxu0 %vm337_vm1, %v5330_v18  ;;  %206 = vperm.xlu1 %5100, %v4248_v21   ;;  %v5603_v46 = vld [vmem:[%s6137_s5 + $0x5] ss:$0 sm:$0xff]  ;;  %v5608_v47 = vld [vmem:[%s6137_s5] ss:$0 sm:$0xff]  ;;  %v5618_v58 = vld [vmem:[%s6137_s5 + $0x1] ss:$0 sm:$0xff] }
  0x1c   :  { %4573 = vmatmul.mubr.msk.f32.vlgmr.msra.gmra.mrb[4].mxu1 %vm337_vm1, %v5330_v18  ;;  %4961 = vmatpush3.bf16.msra.mxu0 %v5428_v43  ;;  %v5624_v59 = vld [vmem:[%s6137_s5 + $0x6] ss:$0 sm:$0xff]  ;;  %v5630_v61 = vld [vmem:[%s6137_s5 + $0x7] ss:$0 sm:$0xff]  ;;  %v5639_v1 = vld [vmem:[%s6137_s5 + $0x2] ss:$0 sm:$0xff] }
  0x1d   :  { %4967 = vmatpush3.bf16.msra.mxu1 %v5432_v44  ;;  %4962 = vmatprep.subr.bf16.mxu0 %v6146_v3  ;;  %v5645_v14 = vld [vmem:[%s6137_s5 + $0x3] ss:$0 sm:$0xff] }
  0x1e   :  { %4968 = vmatprep.subr.bf16.mxu1 %v6146_v3  ;;  %4583 = vmatprep.mubr.msk.f32.mxu0 %vm5195_vm0, %v6150_v11 }
  0x1f   :  { %4594 = vmatprep.mubr.msk.f32.mxu1 %vm5195_vm0, %v6150_v11  ;;  %160 = vperm.xlu1 %5100, %v4246_v23  }
  0x20   :  { %4964 = vmatpush3.bf16.msra.mxu0 %v5452_v49 }
  0x21   :  { %4970 = vmatpush3.bf16.msra.mxu1 %v5456_v50  ;;  %4971 = vmatprep.subr.bf16.mxu0 %v6146_v3 }
  0x22   :  { %4977 = vmatprep.subr.bf16.mxu1 %v6146_v3 }
  0x23   :  { %4584 = vmatmul.mubr.msk.f32.vlgmr.msra.gmra.mrb[6].mxu0 %vm337_vm1, %v5330_v18  ;;  %164 = vperm.xlu1 %5100, %v4247_v27  }
  0x24   :  { %4595 = vmatmul.mubr.msk.f32.vlgmr.msra.gmra.mrb[6].mxu1 %vm337_vm1, %v5330_v18  ;;  %4973 = vmatpush3.bf16.msra.mxu0 %v5470_v53 }
  0x25   :  { %4974 = vmatprep.subr.bf16.mxu0 %v6146_v3  ;;  %4605 = vmatprep.mubr.msk.f32.mxu0 %vm5195_vm0, %v6150_v11 }
  0x26   :  { %4616 = vmatprep.mubr.msk.f32.mxu1 %vm5195_vm0, %v6150_v11  ;;  %4979 = vmatpush3.bf16.msra.mxu1 %v5503_v60 }
  0x27   :  { %4980 = vmatprep.subr.bf16.mxu1 %v6146_v3  ;;  %218 = vperm.xlu1 %5100, %v4251_v29  }
  0x28   :  { %4976 = vmatpush3.bf16.msra.mxu0 %v5491_v56 }
  0x29   :  { %4983 = vmatprep.subr.bf16.mxu0 %v6146_v3 }
  0x2a   :  { %4982 = vmatpush3.bf16.msra.mxu1 %v5528_v2 }
  0x2b   :  { %4606 = vmatmul.mubr.msk.f32.vlgmr.msra.gmra.mrb[8].mxu0 %vm337_vm1, %v5330_v18  ;;  %4989 = vmatprep.subr.bf16.mxu1 %v6146_v3 }
  0x2c   :  { %4985 = vmatpush3.bf16.msra.mxu0 %v5509_v62  ;;  %4627 = vmatprep.mubr.msk.f32.mxu0 %vm5195_vm0, %v6150_v11 }
  0x2d   :  { %4986 = vmatprep.subr.bf16.mxu0 %v6146_v3  ;;  %4617 = vmatmul.mubr.msk.f32.vlgmr.msra.gmra.mrb[8].mxu1 %vm337_vm1, %v5330_v18 }
  0x2e   :  { %4991 = vmatpush3.bf16.msra.mxu1 %v5542_v10  ;;  %4638 = vmatprep.mubr.msk.f32.mxu1 %vm5195_vm0, %v6150_v11 }
  0x2f   :  { %4992 = vmatprep.subr.bf16.mxu1 %v6146_v3 }
  0x30   :  { %4988 = vmatpush3.bf16.msra.mxu0 %v5533_v6 }
  0x31   :  { %4641 = vmatprep.subr.mxu0 %v6150_v11 }
  0x32   :  { %4994 = vmatpush3.bf16.msra.mxu1 %v5561_v16 }
  0x33   :  { %4628 = vmatmul.mubr.msk.f32.vlgmr.msra.gmra.mrb[10].mxu0 %vm337_vm1, %v5330_v18  ;;  %4656 = vmatprep.subr.mxu1 %v6150_v11 }
  0x34   :  { %4643 = vmatprep.mubr.msk.f32.mxu0 %vm5195_vm0, %v6150_v11 }
  0x35   :  { %4639 = vmatmul.mubr.msk.f32.vlgmr.msra.gmra.mrb[10].mxu1 %vm337_vm1, %v5330_v18  ;;  %v4245_v18 = vld [vmem:[%s6139_s7 + $0x1] ss:$0 sm:$0xff] }
  0x36   :  { %4658 = vmatprep.mubr.msk.f32.mxu1 %vm5195_vm0, %v6150_v11  ;;  %156 = vperm.xlu0 %5099, %v4245_v18   ;;  %v5664_v18 = vld [vmem:[%s6134_s2 + $0x8] sm:$0xff] }
  0x3a   :  { %210 = vperm.xlu0 %5099, %v4249_v24   ;;  %v5669_v24 = vld [vmem:[%s6135_s3 + $0x8] sm:$0xff] }
  0x3b   :  { %6156 = vst [vmem:[#allocation8_spill] sm:$0xff] %v5669_v24 }
  0x3e   :  { %214 = vperm.xlu0 %5099, %v4250_v28  }
  0x99   :  { %v153_v23 = vpop.permute.xlu0 %152 }
  0x9a   :  { %v207_v27 = vpop.permute.xlu1 %206  ;;  %v171_v28 = vmul.f32 %v153_v23, %v5664_v18 }
  0x9b   :  { %v225_v29 = vmul.f32 %v207_v27, %v5669_v24 }
  0xde   :  { %v407_v30 = vpop.f32.mrb[0].mxu0 }
  0xdf   :  { %v4519_v33 = vpop.f32.mrb[1].mxu0  ;;  %v477_v34 = vpop.f32.mrb[0].mxu1  ;;  %v408_v57 = vadd.f32 %v5608_v47, %v407_v30  ;;  %v179_v30 = vadd.f32 1.0, %v171_v28  ;;  %v121_v28 = vld [vmem:[%s6133_s1] sm:$0x1] }
  0xe0   :  { %v4530_v35 = vpop.f32.mrb[1].mxu1  ;;  %v478_v63 = vadd.f32 %v5618_v58, %v477_v34  ;;  %v157_v33 = vpop.permute.xlu0 %156  ;;  %vm123_vm3 = vcmp.gt.f32.partialorder %v121_v28, 0.0 }
  0xe1   :  { %v5675_v34 = vadd.f32 %v225_v29, %v179_v30  ;;  %v172_v35 = vmul.f32 %v157_v33, %v5664_v18  ;;  %v183_v30 = vld [vmem:[%s6135_s3] sm:$0xff] }
  0xe3   :  { %6157 = vst [vmem:[#allocation9_spill] sm:$0xff] %v5675_v34 }
  0xe6   :  { %v547_v36 = vpop.f32.mrb[2].mxu0 }
  0xe7   :  { %v4541_v39 = vpop.f32.mrb[3].mxu0  ;;  %v617_v40 = vpop.f32.mrb[2].mxu1  ;;  %v548_v21 = vadd.f32 %v5639_v1, %v547_v36  ;;  %v180_v36 = vadd.f32 1.0, %v172_v35 }
  0xe8   :  { %v4552_v41 = vpop.f32.mrb[3].mxu1  ;;  %v618_v22 = vadd.f32 %v5645_v14, %v617_v40  ;;  %v211_v39 = vpop.permute.xlu0 %210 }
  0xe9   :  { %v226_v40 = vmul.f32 %v211_v39, %v5669_v24 }
  0xeb   :  { %v5679_v41 = vadd.f32 %v226_v40, %v180_v36  ;;  %v221_v36 = vmul.f32 %v207_v27, %v183_v30 }
  0xed   :  { %6158 = vst [vmem:[#allocation10_spill] sm:$0xff] %v5679_v41 }
  0xee   :  { %v687_v45 = vpop.f32.mrb[4].mxu0 }
  0xef   :  { %v688_v48 = vadd.f32 %v5598_v42, %v687_v45  ;;  %v4563_v51 = vpop.f32.mrb[5].mxu0  ;;  %v757_v52 = vpop.f32.mrb[4].mxu1  ;;  %v5684_v45 = vld [vmem:[%s6137_s5 + $0x8] ss:$0 sm:$0xff] }
  0xf0   :  { %v4574_v54 = vpop.f32.mrb[5].mxu1  ;;  %v758_v55 = vadd.f32 %v5603_v46, %v757_v52 }
  0xf1   :  { %4642 = vmatpush3.xpose.msk.msra.mxu0 %vm1181_vm2, %v688_v48  ;;  %v5691_v54 = vld [vmem:[%s6137_s5 + $0x9] ss:$0 sm:$0xff] }
  0xf2   :  { %4646 = vmatprep.subr.mxu0 %v6150_v11 }
  0xf4   :  { %4644 = vmatmul.mubr.msk.f32.vlgmr.msra.gmra.mrb[12].mxu0 %vm1181_vm2, %v408_v57 }
  0xf5   :  { %4647 = vmatpush3.xpose.msk.msra.mxu0 %vm1181_vm2, %v758_v55  ;;  %4648 = vmatprep.mubr.msk.f32.mxu0 %vm5195_vm0, %v6150_v11 }
  0xf6   :  { %v827_v0 = vpop.f32.mrb[6].mxu0  ;;  %4651 = vmatprep.subr.mxu0 %v6150_v11 }
  0xf7   :  { %v828_v5 = vadd.f32 %v5624_v59, %v827_v0  ;;  %v897_v7 = vpop.f32.mrb[6].mxu1  ;;  %v4585_v9 = vpop.f32.mrb[7].mxu0 }
  0xf8   :  { %v898_v15 = vadd.f32 %v5630_v61, %v897_v7  ;;  %4649 = vmatmul.mubr.msk.f32.vlgmr.msra.gmra.mrb[14].mxu0 %vm1181_vm2, %v478_v63  ;;  %v4596_v17 = vpop.f32.mrb[7].mxu1 }
  0xf9   :  { %4652 = vmatpush3.xpose.msk.msra.mxu0 %vm1181_vm2, %v828_v5  ;;  %4653 = vmatprep.mubr.msk.f32.mxu0 %vm5195_vm0, %v6150_v11  ;;  %v129_v17 = vld [vmem:[%s6134_s2] sm:$0xff] }
  0xfa   :  { %4657 = vmatpush3.xpose.msk.msra.mxu1 %vm1181_vm2, %v898_v15  ;;  %4661 = vmatprep.subr.mxu0 %v6150_v11  ;;  %v239_v15 = vlaneseq  ;;  %v168_v40 = vmul.f32 %v157_v33, %v129_v17 }
  0xfb   :  { %4666 = vmatprep.subr.mxu1 %v6150_v11 }
  0xfc   :  { %4654 = vmatmul.mubr.msk.f32.vlgmr.msra.gmra.mrb[16].mxu0 %vm1181_vm2, %v548_v21  ;;  %v5702_v21 = vpop.permute.xlu1 %160  ;;  %v5707_v29 = vshrl.u32 %v239_v15, 7 }
  0xfd   :  { %4659 = vmatmul.mubr.msk.f32.vlgmr.msra.gmra.mrb[12].mxu1 %vm1181_vm2, %v618_v22  ;;  %4663 = vmatprep.mubr.msk.f32.mxu0 %vm5195_vm0, %v6150_v11  ;;  %v167_v22 = vmul.f32 %v153_v23, %v129_v17  ;;  %v4242_v23 = vsel %vm123_vm3, 1.0, %v6150_v11 }
  0xfe   :  { %4668 = vmatprep.mubr.msk.f32.mxu1 %vm5195_vm0, %v6150_v11  ;;  %v967_v48 = vpop.f32.mrb[8].mxu0  ;;  %6159 = vst [vmem:[#allocation11_spill] sm:$0xff] %v5707_v29 }
  0xff   :  { %v968_v51 = vadd.f32 %v5684_v45, %v967_v48  ;;  %v4607_v52 = vpop.f32.mrb[9].mxu0  ;;  %v175_v35 = vadd.f32 1.0, %v167_v22 }
 0x100   :  { %v1037_v55 = vpop.f32.mrb[8].mxu1  ;;  %v5712_v48 = vpop.permute.xlu1 %164 }
 0x101   :  { %4662 = vmatpush3.msra.mxu0 %v968_v51  ;;  %v1038_v57 = vadd.f32 %v5691_v54, %v1037_v55  ;;  %v4618_v0 = vpop.f32.mrb[9].mxu1  ;;  %6160 = vst [vmem:[#allocation12_spill] sm:$0xff] %v5712_v48  ;;  %v5715_v51 = vsub.s32 0, %v5707_v29  ;;  %v229_v52 = vadd.f32 %v221_v36, %v175_v35  ;;  %v176_v55 = vadd.f32 1.0, %v168_v40 }
 0x102   :  { %4671 = vmatprep.subr.mxu0 %v6150_v11  ;;  %v222_v0 = vmul.f32 %v211_v39, %v183_v30 }
 0x103   :  { %4667 = vmatpush3.msra.mxu1 %v1038_v57  ;;  %v169_v57 = vmul.f32 %v5702_v21, %v129_v17  ;;  %v242_v27 = vrot.slane %v4242_v23, %v5715_v51 }
 0x104   :  { %4676 = vmatprep.subr.mxu1 %v6150_v11  ;;  %v5723_v33 = vpop.permute.xlu1 %218  ;;  %v230_v22 = vadd.f32 %v222_v0, %v176_v55 }
 0x105   :  { %v177_v15 = vadd.f32 1.0, %v169_v57  ;;  %v249_v3 = vmul.f32 %v242_v27, %v229_v52  ;;  %v224_v35 = vmul.f32 %v5723_v33, %v183_v30 }
 0x106   :  { %v5694_v63 = vpop.f32.mrb[10].mxu0  ;;  %v250_v11 = vmul.f32 %v242_v27, %v230_v22 }
 0x107   :  { %v4629_v5 = vpop.f32.mrb[11].mxu0  ;;  %v257_v40 = vmul.f32 0.35355338, %v249_v3 }
 0x108   :  { %v5697_v7 = vpop.f32.mrb[10].mxu1  ;;  %v5719_v5 = vpop.permute.xlu0 %214  ;;  %v258_v23 = vmul.f32 0.35355338, %v250_v11 }
 0x109   :  { %v4640_v9 = vpop.f32.mrb[11].mxu1  ;;  %6161 = vst [vmem:[#allocation13_spill] sm:$0xff] %v5719_v5  ;;  %v223_v28 = vmul.f32 %v5719_v5, %v183_v30 }
 0x10a   :  { %v170_v9 = vmul.f32 %v5712_v48, %v129_v17 }
 0x10b   :  { %v231_v36 = vadd.f32 %v223_v28, %v177_v15 }
 0x10c   :  { %v178_v29 = vadd.f32 1.0, %v170_v9 }
 0x10d   :  { %v251_v48 = vmul.f32 %v242_v27, %v231_v36 }
 0x10e   :  { %v232_v41 = vadd.f32 %v224_v35, %v178_v29 }
 0x10f   :  { %v259_v9 = vmul.f32 0.35355338, %v251_v48 }
 0x110   :  { %v252_v5 = vmul.f32 %v242_v27, %v232_v41 }
 0x112   :  { %v260_v3 = vmul.f32 0.35355338, %v252_v5 }
 0x1c7   :  { %v1254_v39 = vpop.f32.mrb[12].mxu0 }
 0x1c8   :  { %v1486_v34 = vmul.f32 %v1254_v39, %v257_v40  ;;  %v4645_v24 = vpop.f32.mrb[13].mxu0 }
 0x1ca   :  { %v1490_v17 = vsel %vm1181_vm2, %v1486_v34, -inf }
 0x1cb   :  { %1491 = vmax.xlane.f32.xlu0 %v1490_v17  ;;  %v1330_v57 = vpop.f32.mrb[14].mxu0 }
 0x1cc   :  { %v1487_v55 = vmul.f32 %v1330_v57, %v258_v23  ;;  %v4650_v0 = vpop.f32.mrb[15].mxu0 }
 0x1ce   :  { %v1493_v52 = vsel %vm1181_vm2, %v1487_v55, -inf }
 0x1cf   :  { %1494 = vmax.xlane.f32.xlu1 %v1493_v52  ;;  %v1406_v30 = vpop.f32.mrb[16].mxu0 }
 0x1d0   :  { %v1482_v15 = vpop.f32.mrb[12].mxu1  ;;  %v1488_v22 = vmul.f32 %v1406_v30, %v259_v9  ;;  %v4655_v29 = vpop.f32.mrb[17].mxu0 }
 0x1d1   :  { %v4660_v28 = vpop.f32.mrb[13].mxu1  ;;  %v1489_v24 = vmul.f32 %v1482_v15, %v260_v3 }
 0x1d2   :  { %v1496_v35 = vsel %vm1181_vm2, %v1488_v22, -inf }
 0x1d3   :  { %1497 = vmax.xlane.f32.xlu0 %v1496_v35  ;;  %v1499_v11 = vsel %vm1181_vm2, %v1489_v24, -inf }
 0x1d7   :  { %1500 = vmax.xlane.f32.xlu0 %v1499_v11  ;;  %v5738_v11 = vld [vmem:[%s6137_s5 + $0xa] ss:$0 sm:$0xff] }
 0x258   :  { %v1492_v36 = vpop.xlane.xlu0 %1491 }
 0x259   :  { %v1502_v40 = vsub.f32 %v1486_v34, %v1492_v36 }
 0x25b   :  { %v1506_v41 = vmul.f32 1.442695, %v1502_v40 }
 0x25c   :  { %v1495_v27 = vpop.xlane.xlu1 %1494 }
 0x25d   :  { %5101 = vpow2.f32 %v1506_v41  ;;  %v1503_v48 = vsub.f32 %v1487_v55, %v1495_v27  ;;  %v1108_v27 = vadd.f32 %v5738_v11, %v5694_v63 }
 0x25f   :  { %v1508_v39 = vmul.f32 1.442695, %v1503_v48  ;;  %v5745_v48 = vld [vmem:[%s6137_s5 + $0xb] ss:$0 sm:$0xff] }
 0x260   :  { %v1498_v17 = vpop.xlane.xlu0 %1497  ;;  %v1178_v63 = vadd.f32 %v5745_v48, %v5697_v7 }
 0x261   :  { %5103 = vpow2.f32 %v1508_v39  ;;  %v1504_v5 = vsub.f32 %v1488_v22, %v1498_v17  ;;  %v6162_v17 = vmov 0.0  }
 0x263   :  { %v1510_v23 = vmul.f32 1.442695, %v1504_v5 }
 0x264   :  { %v1501_v57 = vpop.xlane.xlu0 %1500 }
 0x265   :  { %5105 = vpow2.f32 %v1510_v23  ;;  %v1505_v0 = vsub.f32 %v1489_v24, %v1501_v57 }
 0x267   :  { %v5102_v52 = vpop.eup %5101  ;;  %v1512_v9 = vmul.f32 1.442695, %v1505_v0 }
 0x268   :  { %v1514_v30 = vsel %vm1181_vm2, %v5102_v52, 0.0 }
 0x269   :  { %5107 = vpow2.f32 %v1512_v9  ;;  %1515 = vadd.xlane.f32.xlu1 %v1514_v30  ;;  %v5777_v9 = vld [vmem:[%s6138_s6 + $0x8] sm:$0xff]  ;;  %v5784_v30 = vld [vmem:[%s6138_s6 + $0x10] sm:$0xff] }
 0x26b   :  { %v5104_v3 = vpop.eup %5103 }
 0x26c   :  { %v1517_v34 = vsel %vm1181_vm2, %v5104_v3, 0.0 }
 0x26d   :  { %1518 = vadd.xlane.f32.xlu0 %v1517_v34 }
 0x26f   :  { %v5106_v15 = vpop.eup %5105 }
 0x270   :  { %v1520_v55 = vsel %vm1181_vm2, %v5106_v15, 0.0 }
 0x271   :  { %1521 = vadd.xlane.f32.xlu1 %v1520_v55  ;;  %v5794_v55 = vld [vmem:[%s6138_s6 + $0x18] sm:$0xff] }
 0x273   :  { %v5108_v29 = vpop.eup %5107 }
 0x274   :  { %v1523_v22 = vsel %vm1181_vm2, %v5108_v29, 0.0 }
 0x275   :  { %1524 = vadd.xlane.f32.xlu0 %v1523_v22 }
 0x2f6   :  { %v1516_v28 = vpop.xlane.xlu1 %1515 }
 0x2f7   :  { %5109 = vrcp.f32 %v1516_v28 }
 0x2fa   :  { %v1519_v24 = vpop.xlane.xlu0 %1518 }
 0x2fb   :  { %5111 = vrcp.f32 %v1519_v24 }
 0x2fe   :  { %v1522_v35 = vpop.xlane.xlu1 %1521 }
 0x2ff   :  { %5113 = vrcp.f32 %v1522_v35 }
 0x301   :  { %v5110_v36 = vpop.eup %5109 }
 0x302   :  { %v1530_v40 = vmul.f32 %v5110_v36, %v5102_v52  ;;  %v1525_v41 = vpop.xlane.xlu0 %1524  ;;  %v5770_v52 = vld [vmem:[%s6138_s6] sm:$0xff] }
 0x303   :  { %5115 = vrcp.f32 %v1525_v41 }
 0x304   :  { %1534 = vst.msk [vmem:[#allocation4] sm:$0xff] %vm1181_vm2, %v1530_v40  ;;  %4664 = vmatmul.mubr.msk.f32.vlgmr.msra.gmra.mrb[18].mxu0 %vm1181_vm2, %v1530_v40  ;;  %v5812_v40 = vld [vmem:[%s6132_s0 + $0x8] sm:$0xff] }
 0x305   :  { %v5112_v39 = vpop.eup %5111  ;;  %4672 = vmatpush3.msra.mxu0 %v1108_v27  ;;  %4673 = vmatprep.mubr.msk.f32.mxu0 %vm5195_vm0, %v6162_v17 }
 0x306   :  { %v1531_v5 = vmul.f32 %v5112_v39, %v5104_v3  ;;  %4681 = vmatprep.subr.mxu0 %v6162_v17 }
 0x308   :  { %1535 = vst.msk [vmem:[#allocation4 + $0x8] sm:$0xff] %vm1181_vm2, %v1531_v5  ;;  %4669 = vmatmul.mubr.msk.f32.vlgmr.msra.gmra.mrb[14].mxu1 %vm1181_vm2, %v1531_v5 }
 0x309   :  { %v5114_v23 = vpop.eup %5113  ;;  %4677 = vmatpush3.msra.mxu1 %v1178_v63  ;;  %4678 = vmatprep.mubr.msk.f32.mxu1 %vm5195_vm0, %v6162_v17 }
 0x30a   :  { %v1532_v57 = vmul.f32 %v5114_v23, %v5106_v15  ;;  %4686 = vmatprep.subr.mxu1 %v6162_v17  ;;  %v6163_v15 = vmov 0.0|0.0  }
 0x30c   :  { %1536 = vst.msk [vmem:[#allocation4 + $0x10] sm:$0xff] %vm1181_vm2, %v1532_v57  ;;  %4674 = vmatmul.mubr.msk.f32.vlgmr.msra.gmra.mrb[20].mxu0 %vm1181_vm2, %v1532_v57 }
 0x30d   :  { %v5116_v0 = vpop.eup %5115  ;;  %4683 = vmatprep.mubr.msk.f32.mxu0 %vm5195_vm0, %v6162_v17  ;;  %4682 = vmatpush3.msra.mxu0 %v5770_v52 }
 0x30e   :  { %v1533_v7 = vmul.f32 %v5116_v0, %v5108_v29  ;;  %4691 = vmatprep.subr.mxu0 %v6162_v17 }
 0x310   :  { %1537 = vst.msk [vmem:[#allocation4 + $0x18] sm:$0xff] %vm1181_vm2, %v1533_v7  ;;  %4679 = vmatmul.mubr.msk.f32.vlgmr.msra.gmra.mrb[16].mxu1 %vm1181_vm2, %v1533_v7 }
 0x311   :  { %4688 = vmatprep.mubr.msk.f32.mxu1 %vm5195_vm0, %v6162_v17  ;;  %4687 = vmatpush3.msra.mxu1 %v5777_v9 }
 0x312   :  { %4696 = vmatprep.subr.mxu1 %v6162_v17 }
 0x3d7   :  { %v1607_v3 = vpop.f32.mrb[18].mxu0 }
 0x3d8   :  { %v4665_v34 = vpop.f32.mrb[19].mxu0  ;;  %4684 = vmatmul.mubr.msk.f32.vlgmr.msra.gmra.mrb[22].mxu0 %vm1181_vm2, %v1607_v3 }
 0x3d9   :  { %4692 = vmatpush3.msra.mxu0 %v5784_v30  ;;  %4693 = vmatprep.mubr.msk.f32.mxu0 %vm5195_vm0, %v6162_v17 }
 0x3da   :  { %4995 = vmatprep.subr.bf16.mxu0 %v6163_v15 }
 0x3db   :  { %v1680_v29 = vpop.f32.mrb[14].mxu1 }
 0x3dc   :  { %v4670_v22 = vpop.f32.mrb[15].mxu1  ;;  %4689 = vmatmul.mubr.msk.f32.vlgmr.msra.gmra.mrb[18].mxu1 %vm1181_vm2, %v1680_v29 }
 0x3dd   :  { %4697 = vmatpush3.msra.mxu1 %v5794_v55  ;;  %4698 = vmatprep.mubr.msk.f32.mxu1 %vm5195_vm0, %v6162_v17 }
 0x3de   :  { %5001 = vmatprep.subr.bf16.mxu1 %v6163_v15 }
 0x3df   :  { %v1753_v28 = vpop.f32.mrb[20].mxu0 }
 0x3e0   :  { %v4675_v24 = vpop.f32.mrb[21].mxu0  ;;  %4694 = vmatmul.mubr.msk.f32.vlgmr.msra.gmra.mrb[24].mxu0 %vm1181_vm2, %v1753_v28 }
 0x3e1   :  { %4997 = vmatpush3.bf16.msra.mxu0 %v5283_v4  ;;  %4709 = vmatprep.mubr.msk.f32.mxu0 %vm5195_vm0, %v6162_v17 }
 0x3e2   :  { %4998 = vmatprep.subr.bf16.mxu0 %v6163_v15 }
 0x3e3   :  { %v1826_v35 = vpop.f32.mrb[16].mxu1 }
 0x3e4   :  { %v4680_v36 = vpop.f32.mrb[17].mxu1  ;;  %4699 = vmatmul.mubr.msk.f32.vlgmr.msra.gmra.mrb[20].mxu1 %vm1181_vm2, %v1826_v35  ;;  %v122_v35 = vld [vmem:[%s6133_s1 + $0x1] sm:$0x1] }
 0x3e5   :  { %5000 = vmatpush3.bf16.msra.mxu0 %v5307_v12  ;;  %5003 = vmatpush3.bf16.msra.mxu1 %v5294_v8  ;;  %vm124_vm4 = vcmp.gt.f32.partialorder %v122_v35, 0.0 }
 0x3e6   :  { %5004 = vmatprep.subr.bf16.mxu1 %v6163_v15  ;;  %5007 = vmatprep.subr.bf16.mxu0 %v6163_v15  ;;  %v4243_v36 = vsel %vm124_vm4, 1.0, %v6162_v17 }
 0x3e7   :  { %4720 = vmatprep.mubr.msk.f32.mxu1 %vm5195_vm0, %v6162_v17 }
 0x3e8   :  { %4710 = vmatmul.mubr.msk.f32.vlgmr.msra.gmra.mrb[26].mxu0 %vm337_vm1, %v5812_v40 }
 0x3e9   :  { %5006 = vmatpush3.bf16.msra.mxu1 %v5311_v13  ;;  %5009 = vmatpush3.bf16.msra.mxu0 %v5332_v19 }
 0x3ea   :  { %5010 = vmatprep.subr.bf16.mxu0 %v6163_v15  ;;  %5013 = vmatprep.subr.bf16.mxu1 %v6163_v15 }
 0x3eb   :  { %4731 = vmatprep.mubr.msk.f32.mxu0 %vm5195_vm0, %v6162_v17 }
 0x3ec   :  { %4721 = vmatmul.mubr.msk.f32.vlgmr.msra.gmra.mrb[22].mxu1 %vm337_vm1, %v5812_v40 }
 0x3ed   :  { %5012 = vmatpush3.bf16.msra.mxu0 %v5356_v25  ;;  %5015 = vmatpush3.bf16.msra.mxu1 %v5336_v20 }
 0x3ee   :  { %5016 = vmatprep.subr.bf16.mxu1 %v6163_v15  ;;  %5019 = vmatprep.subr.bf16.mxu0 %v6163_v15 }
 0x3ef   :  { %4742 = vmatprep.mubr.msk.f32.mxu1 %vm5195_vm0, %v6162_v17 }
 0x3f0   :  { %4732 = vmatmul.mubr.msk.f32.vlgmr.msra.gmra.mrb[28].mxu0 %vm337_vm1, %v5812_v40 }
 0x3f1   :  { %5018 = vmatpush3.bf16.msra.mxu1 %v5360_v26  ;;  %5021 = vmatpush3.bf16.msra.mxu0 %v5380_v31 }
 0x3f2   :  { %5022 = vmatprep.subr.bf16.mxu0 %v6163_v15  ;;  %5025 = vmatprep.subr.bf16.mxu1 %v6163_v15 }
 0x3f3   :  { %4753 = vmatprep.mubr.msk.f32.mxu0 %vm5195_vm0, %v6162_v17 }
 0x3f4   :  { %4743 = vmatmul.mubr.msk.f32.vlgmr.msra.gmra.mrb[24].mxu1 %vm337_vm1, %v5812_v40 }
 0x3f5   :  { %5024 = vmatpush3.bf16.msra.mxu0 %v5404_v37  ;;  %5027 = vmatpush3.bf16.msra.mxu1 %v5384_v32 }
 0x3f6   :  { %5028 = vmatprep.subr.bf16.mxu1 %v6163_v15  ;;  %5031 = vmatprep.subr.bf16.mxu0 %v6163_v15 }
 0x3f7   :  { %4764 = vmatprep.mubr.msk.f32.mxu1 %vm5195_vm0, %v6162_v17 }
 0x3f8   :  { %4754 = vmatmul.mubr.msk.f32.vlgmr.msra.gmra.mrb[30].mxu0 %vm337_vm1, %v5812_v40 }
 0x3f9   :  { %5030 = vmatpush3.bf16.msra.mxu1 %v5408_v38  ;;  %5033 = vmatpush3.bf16.msra.mxu0 %v5428_v43 }
 0x3fa   :  { %5034 = vmatprep.subr.bf16.mxu0 %v6163_v15  ;;  %5037 = vmatprep.subr.bf16.mxu1 %v6163_v15 }
 0x3fb   :  { %4775 = vmatprep.mubr.msk.f32.mxu0 %vm5195_vm0, %v6162_v17 }
 0x3fc   :  { %4765 = vmatmul.mubr.msk.f32.vlgmr.msra.gmra.mrb[26].mxu1 %vm337_vm1, %v5812_v40 }
 0x3fd   :  { %5036 = vmatpush3.bf16.msra.mxu0 %v5452_v49  ;;  %5039 = vmatpush3.bf16.msra.mxu1 %v5432_v44 }
 0x3fe   :  { %5040 = vmatprep.subr.bf16.mxu1 %v6163_v15  ;;  %4786 = vmatprep.mubr.msk.f32.mxu1 %vm5195_vm0, %v6162_v17 }
 0x3ff   :  { %5043 = vmatprep.subr.bf16.mxu0 %v6163_v15 }
 0x400   :  { %4776 = vmatmul.mubr.msk.f32.vlgmr.msra.gmra.mrb[32].mxu0 %vm337_vm1, %v5812_v40 }
 0x401   :  { %5042 = vmatpush3.bf16.msra.mxu1 %v5456_v50  ;;  %5045 = vmatpush3.bf16.msra.mxu0 %v5470_v53 }
 0x402   :  { %5046 = vmatprep.subr.bf16.mxu0 %v6163_v15  ;;  %5049 = vmatprep.subr.bf16.mxu1 %v6163_v15 }
 0x403   :  { %4797 = vmatprep.mubr.msk.f32.mxu0 %vm5195_vm0, %v6162_v17 }
 0x404   :  { %4787 = vmatmul.mubr.msk.f32.vlgmr.msra.gmra.mrb[28].mxu1 %vm337_vm1, %v5812_v40 }
 0x405   :  { %5048 = vmatpush3.bf16.msra.mxu0 %v5491_v56  ;;  %5051 = vmatpush3.bf16.msra.mxu1 %v5503_v60 }
 0x406   :  { %5052 = vmatprep.subr.bf16.mxu1 %v6163_v15  ;;  %5055 = vmatprep.subr.bf16.mxu0 %v6163_v15 }
 0x407   :  { %4808 = vmatprep.mubr.msk.f32.mxu1 %vm5195_vm0, %v6162_v17 }
 0x408   :  { %4798 = vmatmul.mubr.msk.f32.vlgmr.msra.gmra.mrb[34].mxu0 %vm337_vm1, %v5812_v40 }
 0x409   :  { %5054 = vmatpush3.bf16.msra.mxu1 %v5528_v2  ;;  %5057 = vmatpush3.bf16.msra.mxu0 %v5509_v62 }
 0x40a   :  { %5058 = vmatprep.subr.bf16.mxu0 %v6163_v15  ;;  %5061 = vmatprep.subr.bf16.mxu1 %v6163_v15 }
 0x40b   :  { %4819 = vmatprep.mubr.msk.f32.mxu0 %vm5195_vm0, %v6162_v17 }
 0x40c   :  { %4809 = vmatmul.mubr.msk.f32.vlgmr.msra.gmra.mrb[30].mxu1 %vm337_vm1, %v5812_v40 }
 0x40d   :  { %5060 = vmatpush3.bf16.msra.mxu0 %v5533_v6  ;;  %5063 = vmatpush3.bf16.msra.mxu1 %v5542_v10 }
 0x40e   :  { %5064 = vmatprep.subr.bf16.mxu1 %v6163_v15  ;;  %4833 = vmatprep.subr.mxu0 %v6162_v17 }
 0x40f   :  { %4830 = vmatprep.mubr.msk.f32.mxu1 %vm5195_vm0, %v6162_v17 }
 0x410   :  { %4820 = vmatmul.mubr.msk.f32.vlgmr.msra.gmra.mrb[36].mxu0 %vm337_vm1, %v5812_v40 }
 0x411   :  { %5066 = vmatpush3.bf16.msra.mxu1 %v5561_v16  ;;  %4835 = vmatprep.mubr.msk.f32.mxu0 %vm5195_vm0, %v6162_v17 }
 0x412   :  { %4838 = vmatprep.subr.mxu1 %v6162_v17 }
 0x414   :  { %4831 = vmatmul.mubr.msk.f32.vlgmr.msra.gmra.mrb[32].mxu1 %vm337_vm1, %v5812_v40 }
 0x415   :  { %4840 = vmatprep.mubr.msk.f32.mxu1 %vm5195_vm0, %v6162_v17 }
 0x4ab   :  { %v1899_v4 = vpop.f32.mrb[22].mxu0 }
 0x4ac   :  { %v4685_v8 = vpop.f32.mrb[23].mxu0  ;;  %v2122_v13 = vsel %vm337_vm1, %v1899_v4, 0.0  ;;  %v246_v4 = vrot.slane %v4243_v36, %v5715_v51 }
 0x4ad   :  { %v6164_v8 = vld [vmem:[#allocation12_spill] sm:$0xff] }
 0x4af   :  { %v1972_v12 = vpop.f32.mrb[18].mxu1 }
 0x4b0   :  { %v2123_v19 = vsel %vm337_vm1, %v1972_v12, 0.0  ;;  %v4690_v20 = vpop.f32.mrb[19].mxu1  ;;  %v174_v12 = vmul.f32 %v6164_v8, %v5664_v18 }
 0x4b1   :  { %v2124_v25 = vadd.f32 %v2123_v19, %v2122_v13  ;;  %v6165_v19 = vld [vmem:[#allocation8_spill] sm:$0xff]  ;;  %v6166_v20 = vld [vmem:[#allocation13_spill] sm:$0xff] }
 0x4b3   :  { %v2045_v26 = vpop.f32.mrb[24].mxu0 }
 0x4b4   :  { %v2125_v31 = vsel %vm337_vm1, %v2045_v26, 0.0  ;;  %v4695_v32 = vpop.f32.mrb[25].mxu0  ;;  %v6167_v26 = vld [vmem:[#allocation9_spill] sm:$0xff] }
 0x4b5   :  { %v2126_v37 = vadd.f32 %v2125_v31, %v2124_v25  ;;  %v227_v25 = vmul.f32 %v6166_v20, %v6165_v19  ;;  %v253_v31 = vmul.f32 %v246_v4, %v6167_v26  ;;  %v182_v32 = vadd.f32 1.0, %v174_v12 }
 0x4b7   :  { %v2118_v38 = vpop.f32.mrb[20].mxu1 }
 0x4b8   :  { %v2127_v43 = vsel %vm337_vm1, %v2118_v38, 0.0  ;;  %v4700_v44 = vpop.f32.mrb[21].mxu1  ;;  %v228_v38 = vmul.f32 %v5723_v33, %v6165_v19 }
 0x4b9   :  { %v5912_v49 = vadd.f32 %v2127_v43, %v2126_v37  ;;  %v261_v43 = vmul.f32 0.35355338, %v253_v31  ;;  %v6168_v44 = vld [vmem:[#allocation10_spill] sm:$0xff] }
 0x4bb   :  { %v2198_v50 = vpop.f32.mrb[26].mxu0 }
 0x4bc   :  { %v4711_v53 = vpop.f32.mrb[27].mxu0  ;;  %v2199_v39 = vadd.f32 %v5608_v47, %v2198_v50  ;;  %v254_v50 = vmul.f32 %v246_v4, %v6168_v44 }
 0x4bf   :  { %v2268_v56 = vpop.f32.mrb[22].mxu1 }
 0x4c0   :  { %v4722_v60 = vpop.f32.mrb[23].mxu1 }
 0x4c1   :  { %v236_v60 = vadd.f32 %v228_v38, %v182_v32 }
 0x4c3   :  { %v2338_v62 = vpop.f32.mrb[28].mxu0 }
 0x4c4   :  { %v4733_v2 = vpop.f32.mrb[29].mxu0 }
 0x4c7   :  { %v2408_v6 = vpop.f32.mrb[24].mxu1 }
 0x4c8   :  { %v4744_v10 = vpop.f32.mrb[25].mxu1 }
 0x4cb   :  { %v2478_v16 = vpop.f32.mrb[30].mxu0 }
 0x4cc   :  { %v2479_v41 = vadd.f32 %v5598_v42, %v2478_v16  ;;  %v4755_v27 = vpop.f32.mrb[31].mxu0  ;;  %v2269_v42 = vadd.f32 %v5618_v58, %v2268_v56 }
 0x4ce   :  { %4834 = vmatpush3.xpose.msk.msra.mxu0 %vm1181_vm2, %v2479_v41 }
 0x4cf   :  { %v2548_v5 = vpop.f32.mrb[26].mxu1  ;;  %4843 = vmatprep.subr.mxu0 %v6162_v17 }
 0x4d0   :  { %v2549_v63 = vadd.f32 %v5603_v46, %v2548_v5  ;;  %v4766_v23 = vpop.f32.mrb[27].mxu1  ;;  %v2339_v46 = vadd.f32 %v5639_v1, %v2338_v62  ;;  %v262_v62 = vmul.f32 0.35355338, %v254_v50 }
 0x4d1   :  { %4836 = vmatmul.mubr.msk.f32.vlgmr.msra.gmra.mrb[38].mxu0 %vm1181_vm2, %v2199_v39  ;;  %v256_v39 = vmul.f32 %v246_v4, %v236_v60 }
 0x4d2   :  { %4839 = vmatpush3.xpose.msk.msra.mxu1 %vm1181_vm2, %v2549_v63  ;;  %4845 = vmatprep.mubr.msk.f32.mxu0 %vm5195_vm0, %v6162_v17 }
 0x4d3   :  { %v2618_v57 = vpop.f32.mrb[32].mxu0  ;;  %4848 = vmatprep.subr.mxu1 %v6162_v17  ;;  %v264_v23 = vmul.f32 0.35355338, %v256_v39 }
 0x4d4   :  { %v2619_v47 = vadd.f32 %v5624_v59, %v2618_v57  ;;  %v4777_v0 = vpop.f32.mrb[33].mxu0  ;;  %v2409_v59 = vadd.f32 %v5645_v14, %v2408_v6 }
 0x4d5   :  { %4841 = vmatmul.mubr.msk.f32.vlgmr.msra.gmra.mrb[34].mxu1 %vm1181_vm2, %v2269_v42 }
 0x4d6   :  { %4844 = vmatpush3.xpose.msk.msra.mxu0 %vm1181_vm2, %v2619_v47  ;;  %4850 = vmatprep.mubr.msk.f32.mxu1 %vm5195_vm0, %v6162_v17 }
 0x4d7   :  { %v2688_v7 = vpop.f32.mrb[28].mxu1  ;;  %4853 = vmatprep.subr.mxu0 %v6162_v17 }
 0x4d8   :  { %v2689_v58 = vadd.f32 %v5630_v61, %v2688_v7  ;;  %v4788_v3 = vpop.f32.mrb[29].mxu1 }
 0x4d9   :  { %4846 = vmatmul.mubr.msk.f32.vlgmr.msra.gmra.mrb[40].mxu0 %vm1181_vm2, %v2339_v46 }
 0x4da   :  { %4849 = vmatpush3.xpose.msk.msra.mxu1 %vm1181_vm2, %v2689_v58  ;;  %4855 = vmatprep.mubr.msk.f32.mxu0 %vm5195_vm0, %v6162_v17 }
 0x4db   :  { %v2758_v34 = vpop.f32.mrb[34].mxu0  ;;  %4858 = vmatprep.subr.mxu1 %v6162_v17 }
 0x4dc   :  { %v2759_v1 = vadd.f32 %v5684_v45, %v2758_v34  ;;  %v4799_v15 = vpop.f32.mrb[35].mxu0 }
 0x4dd   :  { %4851 = vmatmul.mubr.msk.f32.vlgmr.msra.gmra.mrb[36].mxu1 %vm1181_vm2, %v2409_v59 }
 0x4de   :  { %4854 = vmatpush3.msra.mxu0 %v2759_v1  ;;  %4860 = vmatprep.mubr.msk.f32.mxu1 %vm5195_vm0, %v6162_v17 }
 0x4df   :  { %v2828_v61 = vpop.f32.mrb[30].mxu1  ;;  %4863 = vmatprep.subr.mxu0 %v6162_v17 }
 0x4e0   :  { %v2829_v29 = vadd.f32 %v5691_v54, %v2828_v61  ;;  %v4810_v22 = vpop.f32.mrb[31].mxu1  ;;  %v173_v54 = vmul.f32 %v5702_v21, %v5664_v18 }
 0x4e2   :  { %4859 = vmatpush3.msra.mxu1 %v2829_v29  ;;  %v181_v13 = vadd.f32 1.0, %v173_v54  ;;  %v5973_v54 = vld [vmem:[%s6140_s8] sm:$0x3f] }
 0x4e3   :  { %v5945_v14 = vpop.f32.mrb[36].mxu0  ;;  %4868 = vmatprep.subr.mxu1 %v6162_v17  ;;  %v5978_v12 = vrot.slane %v5973_v54, %v5715_v51 }
 0x4e4   :  { %v4821_v28 = vpop.f32.mrb[37].mxu0  ;;  %v235_v37 = vadd.f32 %v227_v25, %v181_v13 }
 0x4e5   :  { %v3924_v20 = vadd.f32 %v5978_v12, %v5912_v49  ;;  %v2899_v49 = vadd.f32 %v5738_v11, %v5945_v14 }
 0x4e6   :  { %v255_v2 = vmul.f32 %v246_v4, %v235_v37 }
 0x4e7   :  { %v5948_v45 = vpop.f32.mrb[32].mxu1  ;;  %v3926_v31 = vsel %vm337_vm1, %v3924_v20, 0.0 }
 0x4e8   :  { %v4832_v24 = vpop.f32.mrb[33].mxu1  ;;  %v263_v27 = vmul.f32 0.35355338, %v255_v2 }
 0x5a4   :  { %v3044_v21 = vpop.f32.mrb[38].mxu0 }
 0x5a5   :  { %v3276_v53 = vmul.f32 %v3044_v21, %v261_v43  ;;  %v4837_v56 = vpop.f32.mrb[39].mxu0 }
 0x5a7   :  { %v3280_v18 = vsel %vm1181_vm2, %v3276_v53, -inf }
 0x5a8   :  { %v3120_v6 = vpop.f32.mrb[34].mxu1  ;;  %3281 = vmax.xlane.f32.xlu1 %v3280_v18 }
 0x5a9   :  { %v3277_v10 = vmul.f32 %v3120_v6, %v262_v62  ;;  %v4842_v16 = vpop.f32.mrb[35].mxu1  ;;  %v2969_v62 = vadd.f32 %v5745_v48, %v5948_v45 }
 0x5aa   :  { %v6169_v16 = vld [vmem:[#allocation11_spill] sm:$0xff] }
 0x5ab   :  { %v3283_v41 = vsel %vm1181_vm2, %v3277_v10, -inf }
 0x5ac   :  { %3284 = vmax.xlane.f32.xlu0 %v3283_v41  ;;  %v3196_v33 = vpop.f32.mrb[40].mxu0  ;;  %v3955_v41 = vsub.s32 1, %v6169_v16 }
 0x5ad   :  { %v3278_v5 = vmul.f32 %v3196_v33, %v263_v27  ;;  %v4847_v63 = vpop.f32.mrb[41].mxu0 }
 0x5ae   :  { %v6014_v33 = vrot.slane %v5973_v54, %v3955_v41 }
 0x5af   :  { %v3286_v42 = vsel %vm1181_vm2, %v3278_v5, -inf }
 0x5b0   :  { %v3272_v57 = vpop.f32.mrb[36].mxu1  ;;  %3287 = vmax.xlane.f32.xlu1 %v3286_v42 }
 0x5b1   :  { %v3279_v47 = vmul.f32 %v3272_v57, %v264_v23  ;;  %v4852_v0 = vpop.f32.mrb[37].mxu1 }
 0x5b3   :  { %v3289_v46 = vsel %vm1181_vm2, %v3279_v47, -inf }
 0x5b4   :  { %3290 = vmax.xlane.f32.xlu0 %v3289_v46 }
 0x635   :  { %v3282_v7 = vpop.xlane.xlu1 %3281 }
 0x636   :  { %v3292_v58 = vsub.f32 %v3276_v53, %v3282_v7  ;;  %v5145_v7 = vld [vmem:[%s6132_s0] sm:$0xff] }
 0x638   :  { %v3296_v3 = vmul.f32 1.442695, %v3292_v58 }
 0x639   :  { %v3285_v59 = vpop.xlane.xlu0 %3284 }
 0x63a   :  { %5117 = vpow2.f32 %v3296_v3  ;;  %v3293_v34 = vsub.f32 %v3277_v10, %v3285_v59 }
 0x63c   :  { %v3298_v1 = vmul.f32 1.442695, %v3293_v34 }
 0x63d   :  { %v3288_v15 = vpop.xlane.xlu1 %3287 }
 0x63e   :  { %5119 = vpow2.f32 %v3298_v1  ;;  %v3294_v61 = vsub.f32 %v3278_v5, %v3288_v15  ;;  %v3961_v5 = vsub.s32 2, %v6169_v16 }
 0x640   :  { %v3300_v29 = vmul.f32 1.442695, %v3294_v61  ;;  %v3962_v23 = vrot.slane %v5973_v54, %v3961_v5  ;;  %v4320_v5 = vld [vmem:[%s6142_s10] ss:$0 sm:$0xff]  ;;  %s5198_s10 = smov [#allocation4]  }
 0x641   :  { %v3291_v22 = vpop.xlane.xlu0 %3290 }
 0x642   :  { %5121 = vpow2.f32 %v3300_v29  ;;  %v3295_v28 = vsub.f32 %v3279_v47, %v3291_v22 }
 0x644   :  { %v5118_v24 = vpop.eup %5117  ;;  %v3302_v35 = vmul.f32 1.442695, %v3295_v28 }
 0x645   :  { %v3304_v36 = vsel %vm1181_vm2, %v5118_v24, 0.0 }
 0x646   :  { %5123 = vpow2.f32 %v3302_v35  ;;  %3305 = vadd.xlane.f32.xlu1 %v3304_v36 }
 0x648   :  { %v5120_v4 = vpop.eup %5119 }
 0x649   :  { %v3307_v8 = vsel %vm1181_vm2, %v5120_v4, 0.0 }
 0x64a   :  { %3308 = vadd.xlane.f32.xlu0 %v3307_v8 }
 0x64c   :  { %v5122_v13 = vpop.eup %5121 }
 0x64d   :  { %v3310_v19 = vsel %vm1181_vm2, %v5122_v13, 0.0 }
 0x64e   :  { %3311 = vadd.xlane.f32.xlu1 %v3310_v19 }
 0x650   :  { %v5124_v25 = vpop.eup %5123 }
 0x651   :  { %v3313_v26 = vsel %vm1181_vm2, %v5124_v25, 0.0 }
 0x652   :  { %3314 = vadd.xlane.f32.xlu0 %v3313_v26  ;;  %3927 = vadd.xlane.f32.xlu1 %v3926_v31 }
 0x6d3   :  { %v3306_v32 = vpop.xlane.xlu1 %3305 }
 0x6d4   :  { %5125 = vrcp.f32 %v3306_v32 }
 0x6d7   :  { %v3309_v37 = vpop.xlane.xlu0 %3308 }
 0x6d8   :  { %5127 = vrcp.f32 %v3309_v37 }
 0x6db   :  { %v3312_v51 = vpop.xlane.xlu1 %3311 }
 0x6dc   :  { %5129 = vrcp.f32 %v3312_v51  ;;  %v3967_v51 = vld [vmem:[%s6141_s9] sm:$0xff] }
 0x6de   :  { %v5126_v38 = vpop.eup %5125 }
 0x6df   :  { %v3320_v43 = vmul.f32 %v5126_v38, %v5118_v24  ;;  %v3315_v44 = vpop.xlane.xlu0 %3314  ;;  %v3928_v50 = vpop.xlane.xlu1 %3927  ;;  %v3968_v38 = vld [vmem:[%s6141_s9 + $0x8] sm:$0xff] }
 0x6e0   :  { %5131 = vrcp.f32 %v3315_v44  ;;  %v3933_v21 = vmul.f32 0.03125, %v3928_v50  ;;  %v3970_v44 = vld [vmem:[%s6141_s9 + $0x18] sm:$0xff] }
 0x6e1   :  { %3325 = vst.msk [vmem:[#allocation4 + $0x20] sm:$0xff] %vm1181_vm2, %v3320_v43  ;;  %4856 = vmatmul.mubr.msk.f32.vlgmr.msra.gmra.mrb[42].mxu0 %vm1181_vm2, %v3320_v43  ;;  %v5067_v43 = vpack.c.bf16 %v3968_v38, %v3967_v51 }
 0x6e2   :  { %v5128_v53 = vpop.eup %5127  ;;  %v3935_v56 = vsub.f32 %v3924_v20, %v3933_v21  ;;  %4864 = vmatpush3.msra.mxu0 %v2899_v49  ;;  %4865 = vmatprep.mubr.msk.f32.mxu0 %vm5195_vm0, %v6162_v17 }
 0x6e3   :  { %v3321_v60 = vmul.f32 %v5128_v53, %v5120_v4  ;;  %4873 = vmatprep.subr.mxu0 %v6162_v17 }
 0x6e4   :  { %v3937_v18 = vmul.f32 %v3935_v56, %v3935_v56 }
 0x6e5   :  { %3326 = vst.msk [vmem:[#allocation4 + $0x28] sm:$0xff] %vm1181_vm2, %v3321_v60  ;;  %4861 = vmatmul.mubr.msk.f32.vlgmr.msra.gmra.mrb[38].mxu1 %vm1181_vm2, %v3321_v60 }
 0x6e6   :  { %v5130_v11 = vpop.eup %5129  ;;  %4869 = vmatpush3.msra.mxu1 %v2969_v62  ;;  %v3939_v14 = vsel %vm337_vm1, %v3937_v18, 0.0  ;;  %4870 = vmatprep.mubr.msk.f32.mxu1 %vm5195_vm0, %v6162_v17 }
 0x6e7   :  { %v3322_v2 = vmul.f32 %v5130_v11, %v5122_v13  ;;  %3940 = vadd.xlane.f32.xlu1 %v3939_v14  ;;  %4878 = vmatprep.subr.mxu1 %v6162_v17  ;;  %v4070_v14 = vld [vmem:[%s6143_s11] sm:$0xff] }
 0x6e9   :  { %3327 = vst.msk [vmem:[#allocation4 + $0x30] sm:$0xff] %vm1181_vm2, %v3322_v2  ;;  %4866 = vmatmul.mubr.msk.f32.vlgmr.msra.gmra.mrb[44].mxu0 %vm1181_vm2, %v3322_v2  ;;  %v4071_v2 = vld [vmem:[%s6143_s11 + $0x8] sm:$0xff] }
 0x6ea   :  { %v5132_v48 = vpop.eup %5131  ;;  %4874 = vmatpush3.msra.mxu0 %v5770_v52  ;;  %4875 = vmatprep.mubr.msk.f32.mxu0 %vm5195_vm0, %v6162_v17 }
 0x6eb   :  { %v3323_v45 = vmul.f32 %v5132_v48, %v5124_v25  ;;  %4883 = vmatprep.subr.mxu0 %v6162_v17  ;;  %v5075_v48 = vpack.c.bf16 %v4071_v2, %v4070_v14 }
 0x6ed   :  { %3328 = vst.msk [vmem:[#allocation4 + $0x38] sm:$0xff] %vm1181_vm2, %v3323_v45  ;;  %4871 = vmatmul.mubr.msk.f32.vlgmr.msra.gmra.mrb[40].mxu1 %vm1181_vm2, %v3323_v45  ;;  %v4072_v45 = vld [vmem:[%s6143_s11 + $0x10] sm:$0xff] }
 0x6ee   :  { %4879 = vmatpush3.msra.mxu1 %v5777_v9  ;;  %4880 = vmatprep.mubr.msk.f32.mxu1 %vm5195_vm0, %v6162_v17 }
 0x6ef   :  { %4888 = vmatprep.subr.mxu1 %v6162_v17 }
 0x774   :  { %v3941_v6 = vpop.xlane.xlu1 %3940 }
 0x775   :  { %v3945_v10 = vmul.f32 0.03125, %v3941_v6 }
 0x777   :  { %v3947_v52 = vadd.f32 1e-05, %v3945_v10  ;;  %v4074_v10 = vld [vmem:[%s6143_s11 + $0x20] sm:$0xff] }
 0x779   :  { %5133 = vrsqrt.f32 %v3947_v52  ;;  %v4075_v52 = vld [vmem:[%s6143_s11 + $0x28] sm:$0xff] }
 0x77a   :  { %v5083_v41 = vpack.c.bf16 %v4075_v52, %v4074_v10 }
 0x783   :  { %v5134_v27 = vpop.eup %5133 }
 0x784   :  { %v3951_v39 = vmul.f32 %v5134_v27, %v3935_v56  ;;  %v4076_v27 = vld [vmem:[%s6143_s11 + $0x30] sm:$0xff] }
 0x786   :  { %v3957_v9 = vmul.f32 %v6014_v33, %v3951_v39  ;;  %v4077_v39 = vld [vmem:[%s6143_s11 + $0x38] sm:$0xff] }
 0x788   :  { %v3963_v47 = vadd.f32 %v3962_v23, %v3957_v9 }
 0x78a   :  { %v6030_v58 = vadd.f32 %v5145_v7, %v3963_v47 }
 0x7b4   :  { %v3398_v63 = vpop.f32.mrb[42].mxu0 }
 0x7b5   :  { %v4857_v42 = vpop.f32.mrb[43].mxu0  ;;  %4876 = vmatmul.mubr.msk.f32.vlgmr.msra.gmra.mrb[46].mxu0 %vm1181_vm2, %v3398_v63 }
 0x7b6   :  { %4884 = vmatpush3.msra.mxu0 %v5784_v30  ;;  %4885 = vmatprep.mubr.msk.f32.mxu0 %vm5195_vm0, %v6162_v17 }
 0x7b7   :  { %5068 = vmatprep.subr.bf16.mxu0 %v5067_v43 }
 0x7b8   :  { %v3471_v57 = vpop.f32.mrb[38].mxu1 }
 0x7b9   :  { %v4862_v0 = vpop.f32.mrb[39].mxu1  ;;  %4881 = vmatmul.mubr.msk.f32.vlgmr.msra.gmra.mrb[42].mxu1 %vm1181_vm2, %v3471_v57 }
 0x7ba   :  { %4889 = vmatpush3.msra.mxu1 %v5794_v55  ;;  %4890 = vmatprep.mubr.msk.f32.mxu1 %vm5195_vm0, %v6162_v17 }
 0x7bb   :  { %5076 = vmatprep.subr.bf16.mxu1 %v5075_v48 }
 0x7bc   :  { %v3544_v46 = vpop.f32.mrb[44].mxu0 }
 0x7bd   :  { %v4867_v30 = vpop.f32.mrb[45].mxu0  ;;  %4886 = vmatmul.mubr.msk.f32.vlgmr.msra.gmra.mrb[48].mxu0 %vm1181_vm2, %v3544_v46 }
 0x7be   :  { %4901 = vmatprep.mubr.msk.f32.mxu0 %vm337_vm1, %v6030_v58  ;;  %5070 = vmatpush3.bf16.msra.mxu0 %v5067_v43 }
 0x7c0   :  { %v3617_v3 = vpop.f32.mrb[40].mxu1 }
 0x7c1   :  { %v4872_v59 = vpop.f32.mrb[41].mxu1  ;;  %4891 = vmatmul.mubr.msk.f32.vlgmr.msra.gmra.mrb[44].mxu1 %vm1181_vm2, %v3617_v3 }
 0x7c2   :  { %5078 = vmatpush3.bf16.msra.mxu1 %v5075_v48 }
 0x888   :  { %v3690_v55 = vpop.f32.mrb[46].mxu0 }
 0x889   :  { %v4877_v34 = vpop.f32.mrb[47].mxu0  ;;  %v3913_v1 = vsel %vm337_vm1, %v3690_v55, 0.0 }
 0x88c   :  { %v3763_v17 = vpop.f32.mrb[42].mxu1 }
 0x88d   :  { %v3914_v15 = vsel %vm337_vm1, %v3763_v17, 0.0  ;;  %v4882_v61 = vpop.f32.mrb[43].mxu1  ;;  %v4080_v17 = vsub.s32 5, %v6169_v16 }
 0x88e   :  { %v3915_v29 = vadd.f32 %v3914_v15, %v3913_v1 }
 0x88f   :  { %v4081_v1 = vrot.slane %v5973_v54, %v4080_v17 }
 0x890   :  { %v3836_v22 = vpop.f32.mrb[48].mxu0 }
 0x891   :  { %v3916_v28 = vsel %vm337_vm1, %v3836_v22, 0.0  ;;  %v4887_v24 = vpop.f32.mrb[49].mxu0 }
 0x892   :  { %v3917_v35 = vadd.f32 %v3916_v28, %v3915_v29 }
 0x894   :  { %v3909_v36 = vpop.f32.mrb[44].mxu1 }
 0x895   :  { %v3918_v4 = vsel %vm337_vm1, %v3909_v36, 0.0  ;;  %v4892_v8 = vpop.f32.mrb[45].mxu1 }
 0x896   :  { %v3919_v13 = vadd.f32 %v3918_v4, %v3917_v35 }
 0x898   :  { %v3925_v19 = vadd.f32 %v5978_v12, %v3919_v13  ;;  %v3969_v12 = vld [vmem:[%s6141_s9 + $0x10] sm:$0xff] }
 0x899   :  { %v5071_v50 = vpack.c.bf16 %v3970_v44, %v3969_v12 }
 0x89a   :  { %v3929_v20 = vsel %vm337_vm1, %v3925_v19, 0.0 }
 0x89b   :  { %3930 = vadd.xlane.f32.xlu0 %v3929_v20  ;;  %5072 = vmatprep.subr.bf16.mxu0 %v5071_v50 }
 0x89c   :  { %5074 = vmatpush3.bf16.msra.mxu0 %v5071_v50 }
 0x928   :  { %v3931_v25 = vpop.xlane.xlu0 %3930 }
 0x929   :  { %v3934_v26 = vmul.f32 0.03125, %v3931_v25 }
 0x92b   :  { %v3936_v31 = vsub.f32 %v3925_v19, %v3934_v26 }
 0x92d   :  { %v3938_v32 = vmul.f32 %v3936_v31, %v3936_v31 }
 0x92f   :  { %v3942_v37 = vsel %vm337_vm1, %v3938_v32, 0.0 }
 0x930   :  { %3943 = vadd.xlane.f32.xlu0 %v3942_v37 }
 0x9bd   :  { %v3944_v49 = vpop.xlane.xlu0 %3943 }
 0x9be   :  { %v3946_v21 = vmul.f32 0.03125, %v3944_v49 }
 0x9c0   :  { %v3948_v53 = vadd.f32 1e-05, %v3946_v21 }
 0x9c2   :  { %5135 = vrsqrt.f32 %v3948_v53 }
 0x9cc   :  { %v5136_v56 = vpop.eup %5135 }
 0x9cd   :  { %v3952_v60 = vmul.f32 %v5136_v56, %v3936_v31 }
 0x9cf   :  { %v3958_v62 = vmul.f32 %v6014_v33, %v3952_v60  ;;  %v5087_v33 = vpack.c.bf16 %v4077_v39, %v4076_v27 }
 0x9d1   :  { %v3964_v18 = vadd.f32 %v3962_v23, %v3958_v62 }
 0x9d3   :  { %v6057_v11 = vadd.f32 %v3964_v18, %v5812_v40  ;;  %v4073_v40 = vld [vmem:[%s6143_s11 + $0x18] sm:$0xff]  ;;  %s4223_s11 = sshll.u32 %s5198_s10, 4  ;;  %s4224_s11 = int_to_ptr.vmem [resolvable:$true] %s4223_s11 }
 0x9d4   :  { %v5079_v6 = vpack.c.bf16 %v4073_v40, %v4072_v45  ;;  %s5146_s22 = scalar_lea.vmem %s4224_s11, 1024  ;;  %p5151_p1 = scmp.lt.s32.totalorder %s4224_s11, %s4224_s11 }
 0x9d5   :  { %4902 = vmatmul.mubr.msk.f32.vlgmr.msra.gmra.mrb[50].mxu0 %vm337_vm1, %v6057_v11  ;;  %p5147_p0 = scmp.ne.s32.totalorder %s4224_s11, %s5146_s22  ;;  %p5152_p2 = scmp.lt.s32.totalorder %s5146_s22, %s5146_s22 }
 0x9d6   :  { %5080 = vmatprep.subr.bf16.mxu1 %v5079_v6 }
 0x9d7   :  { %5082 = vmatpush3.bf16.msra.mxu1 %v5079_v6  ;;  %p5153_p3 = por %p5152_p2, %p5151_p1 }
 0x9d8   :  { %5084 = vmatprep.subr.bf16.mxu1 %v5083_v41 }
 0x9d9   :  { %p5154_p4 = pnand %p5153_p3, %p5147_p0 }
 0x9db   :  { %5086 = vmatpush3.bf16.msra.mxu1 %v5083_v41 }
 0x9dc   :  { %5088 = vmatprep.subr.bf16.mxu1 %v5087_v33 }
 0x9df   :  { %5090 = vmatpush3.bf16.msra.mxu1 %v5087_v33 }
 0xaa8   :  { %v4903_v63 = vpop.f32.mrb[50].mxu0 }
 0xaa9   :  { %v4056_v9 = vadd.f32 %v4903_v63, %v4320_v5  ;;  %v4050_v23 = vpop.f32.mrb[51].mxu0 }
 0xaaa   :  { %v4051_v42 = vadd.f32 %v4320_v5, %v4050_v23 }
 0xaab   :  { %v4063_v57 = vmul.f32 0.70710677, %v4056_v9  ;;  %v4060_v59 = vmul.f32 0.5, %v4056_v9 }
 0xaac   :  { %v4062_v47 = vmul.f32 0.70710677, %v4051_v42  ;;  %v4059_v30 = vmul.f32 0.5, %v4051_v42 }
 0xaad   :  { %5137 = verf.f32 %v4063_v57 }
 0xaae   :  { %5139 = verf.f32 %v4062_v47 }
 0xab7   :  { %v5138_v0 = vpop.eup %5137 }
 0xab8   :  { %v5140_v46 = vpop.eup %5139  ;;  %v4067_v7 = vadd.f32 1.0, %v5138_v0 }
 0xab9   :  { %v4066_v3 = vadd.f32 1.0, %v5140_v46 }
 0xaba   :  { %v4069_v34 = vmul.f32 %v4067_v7, %v4060_v59 }
 0xabb   :  { %v4068_v55 = vmul.f32 %v4066_v3, %v4059_v30 }
 0xabd   :  { %4920 = vmatprep.mubr.msk.f32.mxu1 %vm4082_vm5, %v4068_v55 }
 0xabe   :  { %4921 = vmatmul.mubr.msk.f32.vlgmr.msra.gmra.mrb[46].mxu1 %vm4082_vm5, %v4069_v34 }
 0xb91   :  { %v4922_v15 = vpop.f32.mrb[46].mxu1 }
 0xb92   :  { %v4161_v61 = vadd.f32 %v4922_v15, %v4081_v1  ;;  %v4155_v29 = vpop.f32.mrb[47].mxu1 }
 0xb93   :  { %v4156_v22 = vadd.f32 %v4155_v29, %v4081_v1 }
 0xb94   :  { %v4167_v28 = vsel %vm337_vm1, %v4161_v61, 0.0 }
 0xb95   :  { %4168 = vadd.xlane.f32.xlu0 %v4167_v28  ;;  %v4164_v24 = vsel %vm337_vm1, %v4156_v22, 0.0 }
 0xb96   :  { %4165 = vadd.xlane.f32.xlu1 %v4164_v24 }
 0xc22   :  { %v4169_v35 = vpop.xlane.xlu0 %4168 }
 0xc23   :  { %v4171_v36 = vmul.f32 0.03125, %v4169_v35  ;;  %v4166_v4 = vpop.xlane.xlu1 %4165 }
 0xc24   :  { %v4170_v8 = vmul.f32 0.03125, %v4166_v4 }
 0xc25   :  { %v4173_v13 = vsub.f32 %v4161_v61, %v4171_v36 }
 0xc26   :  { %v4172_v19 = vsub.f32 %v4156_v22, %v4170_v8 }
 0xc27   :  { %v4175_v20 = vmul.f32 %v4173_v13, %v4173_v13 }
 0xc28   :  { %v4174_v25 = vmul.f32 %v4172_v19, %v4172_v19 }
 0xc29   :  { %v4179_v26 = vsel %vm337_vm1, %v4175_v20, 0.0 }
 0xc2a   :  { %4180 = vadd.xlane.f32.xlu0 %v4179_v26  ;;  %v4176_v31 = vsel %vm337_vm1, %v4174_v25, 0.0 }
 0xc2b   :  { %4177 = vadd.xlane.f32.xlu1 %v4176_v31 }
 0xc2c   :  { %5157 = shalt.err (!%p5154_p4)
}
 0xc2d   :  { %s5158_s24 = scalar_lea.hbm %s6145_s13, 1024 }
 0xc2e   :  { %p5159_p5 = scmp.ne.s32.totalorder %s6145_s13, %s5158_s24  ;;  %p5162_p6 = scmp.lt.u32.totalorder %s5158_s24, %s6145_s13 }
 0xc30   :  { %p5164_p7 = pnand %p5162_p6, %p5159_p5 }
 0xc32   :  { %5167 = shalt.err (!%p5164_p7)
}
 0xc33   :  { %s5199_s3 = smov 128   ;;  %s5200_s28 = smov 8   ;;  %v4192_v44 = vsub.s32 3, %v6169_v16  ;;  %v4198_v50 = vsub.s32 4, %v6169_v16 }
 0xc34   :  { %4229 = dma.vmem_to_hbm [thread:$0]  %s4224_s11, 1024, %s6145_s13, [#allocation5], %s5199_s3, %s5199_s3, %s5200_s28  }
 0xc35   :  { %v4193_v49 = vrot.slane %v5973_v54, %v4192_v44  ;;  %v4199_v60 = vrot.slane %v5973_v54, %v4198_v50  ;;  %s5201_s13 = smov [#allocation2]  }
 0xc36   :  { %s4211_s5 = sshll.u32 %s5201_s13, 4  ;;  %s4212_s5 = int_to_ptr.vmem [resolvable:$true] %s4211_s5 }
 0xc37   :  { %s5168_s30 = scalar_lea.vmem %s4212_s5, 256  ;;  %p5173_p9 = scmp.lt.s32.totalorder %s4212_s5, %s4212_s5 }
 0xc38   :  { %p5169_p8 = scmp.ne.s32.totalorder %s4212_s5, %s5168_s30  ;;  %p5174_p10 = scmp.lt.s32.totalorder %s5168_s30, %s5168_s30 }
 0xc3a   :  { %p5175_p11 = por %p5174_p10, %p5173_p9 }
 0xc3c   :  { %p5176_p12 = pnand %p5175_p11, %p5169_p8 }
 0xcb7   :  { %v4181_v32 = vpop.xlane.xlu0 %4180 }
 0xcb8   :  { %v4183_v37 = vmul.f32 0.03125, %v4181_v32  ;;  %v4178_v51 = vpop.xlane.xlu1 %4177 }
 0xcb9   :  { %v4182_v38 = vmul.f32 0.03125, %v4178_v51 }
 0xcba   :  { %v4185_v43 = vadd.f32 1e-05, %v4183_v37 }
 0xcbb   :  { %v4184_v12 = vadd.f32 1e-05, %v4182_v38 }
 0xcbc   :  { %5141 = vrsqrt.f32 %v4185_v43 }
 0xcbd   :  { %5143 = vrsqrt.f32 %v4184_v12 }
 0xcc6   :  { %v5142_v21 = vpop.eup %5141 }
 0xcc7   :  { %v5144_v53 = vpop.eup %5143  ;;  %v4189_v56 = vmul.f32 %v5142_v21, %v4173_v13 }
 0xcc8   :  { %v4188_v62 = vmul.f32 %v5144_v53, %v4172_v19 }
 0xcc9   :  { %v4195_v18 = vmul.f32 %v4193_v49, %v4189_v56 }
 0xcca   :  { %v4194_v14 = vmul.f32 %v4193_v49, %v4188_v62 }
 0xccb   :  { %v4201_v2 = vadd.f32 %v4199_v60, %v4195_v18 }
 0xccc   :  { %v4200_v48 = vadd.f32 %v4199_v60, %v4194_v14 }
 0xccd   :  { %v4203_v45 = vadd.f32 %v4201_v2, %v6057_v11 }
 0xcce   :  { %v4202_v40 = vadd.f32 %v4200_v48, %v6030_v58 }
 0xccf   :  { %4205 = vst.msk [vmem:[#allocation2 + $0x8] sm:$0xff] %vm337_vm1, %v4203_v45 }
 0xcd0   :  { %4204 = vst.msk [vmem:[#allocation2] sm:$0xff] %vm337_vm1, %v4202_v40 }
 0xcd1   :  { %5179 = shalt.err (!%p5176_p12)
}
 0xcd2   :  { %s5180_s16 = scalar_lea.hbm %s6144_s12, 256 }
 0xcd3   :  { %p5181_p13 = scmp.ne.s32.totalorder %s6144_s12, %s5180_s16  ;;  %p5184_p0 = scmp.lt.u32.totalorder %s5180_s16, %s6144_s12 }
 0xcd5   :  { %p5186_p1 = pnand %p5184_p0, %p5181_p13 }
 0xcd7   :  { %5189 = shalt.err (!%p5186_p1)
}
 0xcd8   :  { %4217 = dma.vmem_to_hbm [thread:$0]  %s4212_s5, 256, %s6144_s12, [#allocation3], %s5199_s3, %s5199_s3, %s5200_s28  }
 0xcd9   :  { %5190 = dma.done.wait [#allocation3], 256  }
 0xcda   :  { %5191 = vsyncadd [#allocation3], 4294967040 }
 0xcdb   :  { %5192 = dma.done.wait [#allocation5], 1024  }
 0xcdc   :  { %5193 = vsyncadd [#allocation5], 4294966272 }
 0xcdd   :  { %4236 = vsyncpa [#allocation3], 1 }
 0xcde   :  { %4237 = vsyncpa [#allocation5], 1 }

</bundles_post_ra>
